<compile_context>
chip_gen: v5e
topology: v5e:2x2
jax: 0.10.0
libtpu: 0.0.40
codegen_flags: <defaults>
</compile_context>

<pallas_src>
import functools

import jax
import jax.numpy as jnp
from jax.experimental import pallas as pl
from jax.experimental.pallas import tpu as pltpu

_VMEM_LIMIT = 32 * 1024 * 1024  # safe on v5e/v6e (128 MiB phys) and v7x (64 MiB phys)


def _leaky(v, slope):
    # LeakyReLU; slope == 1.0 degenerates to identity (used for the csff convs).
    return jnp.where(v >= 0.0, v, slope * v)


# ---------------------------------------------------------------------------
# Kernels
# ---------------------------------------------------------------------------
def _conv3x3_bias_act_kernel(x_ref, w_ref, b_ref, o_ref, *, H, W, slope):
    """3x3 conv (input pre-padded) + bias + LeakyReLU, one image per grid step.

    x_ref: (1, H+2, W+2, Cin)   w_ref: (9, Cin, Cout)   b_ref: (1, Cout)
    o_ref: (1, H, W, Cout)
    """
    cin = x_ref.shape[3]
    cout = o_ref.shape[3]
    acc = jnp.zeros((H * W, cout), jnp.float32)
    for dy in range(3):
        for dx in range(3):
            patch = x_ref[0, dy:dy + H, dx:dx + W, :].reshape(H * W, cin)
            acc = acc + jnp.dot(patch, w_ref[dy * 3 + dx],
                                preferred_element_type=jnp.float32)
    acc = acc + b_ref[...]
    o_ref[0] = _leaky(acc, slope).reshape(H, W, cout)


def _conv3x3_act_plus_identity_kernel(h_ref, x_ref, w_ref, b_ref, wi_ref, bi_ref,
                                      o_ref, *, H, W, slope, id_scale):
    """Second resConv 3x3 conv fused with the 1x1 identity branch:

        out = LeakyReLU(conv3x3(h) + b) + id_scale * (x @ wi + bi)

    id_scale = 2.0 covers the non-FFT path (identity(x) is added twice).
    """
    cm = h_ref.shape[3]
    cin = x_ref.shape[3]
    cout = o_ref.shape[3]
    acc = jnp.zeros((H * W, cout), jnp.float32)
    for dy in range(3):
        for dx in range(3):
            patch = h_ref[0, dy:dy + H, dx:dx + W, :].reshape(H * W, cm)
            acc = acc + jnp.dot(patch, w_ref[dy * 3 + dx],
                                preferred_element_type=jnp.float32)
    res = _leaky(acc + b_ref[...], slope)
    ident = jnp.dot(x_ref[0].reshape(H * W, cin), wi_ref[...],
                    preferred_element_type=jnp.float32) + bi_ref[...]
    o_ref[0] = (res + id_scale * ident).reshape(H, W, cout)


def _pw_act_pw_kernel(a_ref, w1_ref, b1_ref, w2_ref, b2_ref, o_ref, *, slope):
    """fftConv2: 1x1 conv -> LeakyReLU -> 1x1 conv, fused, on a row tile."""
    h = _leaky(jnp.dot(a_ref[...], w1_ref[...],
                       preferred_element_type=jnp.float32) + b1_ref[...], slope)
    o_ref[...] = jnp.dot(h, w2_ref[...],
                         preferred_element_type=jnp.float32) + b2_ref[...]


def _matmul_bias_kernel(a_ref, w_ref, b_ref, o_ref):
    """rows @ w + b  (1x1 fusion conv and the im2col'd 4x4-stride-2 downsample)."""
    o_ref[...] = jnp.dot(a_ref[...], w_ref[...],
                         preferred_element_type=jnp.float32) + b_ref[...]


# ---------------------------------------------------------------------------
# Pallas-call wrappers
# ---------------------------------------------------------------------------
def _pick_row_tile(rows):
    """Largest multiple-of-8 divisor of `rows` <= min(1024, rows//2): gives >= 2
    equal 'parallel' row tiles with (8,128)-friendly blocks; else one full block."""
    target = min(1024, max(8, rows // 2))
    for tr in range(target, 7, -1):
        if rows % tr == 0 and tr % 8 == 0:
            return tr
    return rows


def _row_matmul_call(kernel_fn, rows, consts, out_cols):
    """Run `kernel_fn(rows_tile, *consts, out_tile)` over row tiles of (R, K)."""
    R, K = rows.shape
    tr = _pick_row_tile(R)
    in_specs = [pl.BlockSpec((tr, K), lambda r: (r, 0))]
    for c in consts:
        in_specs.append(pl.BlockSpec(c.shape, lambda r, nd=c.ndim: (0,) * nd))
    return pl.pallas_call(
        kernel_fn,
        out_shape=jax.ShapeDtypeStruct((R, out_cols), jnp.float32),
        grid_spec=pltpu.PrefetchScalarGridSpec(
            num_scalar_prefetch=0,
            grid=(R // tr,),
            in_specs=in_specs,
            out_specs=pl.BlockSpec((tr, out_cols), lambda r: (r, 0)),
        ),
        compiler_params=pltpu.CompilerParams(
            dimension_semantics=("parallel",), vmem_limit_bytes=_VMEM_LIMIT),
    )(rows, *consts)


def _conv3x3_w(w_oihw):
    cout, cin = w_oihw.shape[0], w_oihw.shape[1]
    return jnp.transpose(w_oihw, (2, 3, 1, 0)).reshape(9, cin, cout).astype(jnp.float32)


def _pw_w(w_oihw):
    cout, cin = w_oihw.shape[0], w_oihw.shape[1]
    return w_oihw.reshape(cout, cin).T.astype(jnp.float32)


def _bias_row(b):
    return b.reshape(1, -1).astype(jnp.float32)


def _conv3x3_act(x_nhwc, w_oihw, b, slope):
    N, H, W, cin = x_nhwc.shape
    cout = w_oihw.shape[0]
    xp = jnp.pad(x_nhwc, ((0, 0), (1, 1), (1, 1), (0, 0)))
    return pl.pallas_call(
        functools.partial(_conv3x3_bias_act_kernel, H=H, W=W, slope=slope),
        out_shape=jax.ShapeDtypeStruct((N, H, W, cout), jnp.float32),
        grid_spec=pltpu.PrefetchScalarGridSpec(
            num_scalar_prefetch=0,
            grid=(N,),
            in_specs=[
                pl.BlockSpec((1, H + 2, W + 2, cin), lambda n: (n, 0, 0, 0)),
                pl.BlockSpec((9, cin, cout), lambda n: (0, 0, 0)),
                pl.BlockSpec((1, cout), lambda n: (0, 0)),
            ],
            out_specs=pl.BlockSpec((1, H, W, cout), lambda n: (n, 0, 0, 0)),
        ),
        compiler_params=pltpu.CompilerParams(
            dimension_semantics=("parallel",), vmem_limit_bytes=_VMEM_LIMIT),
    )(xp, _conv3x3_w(w_oihw), _bias_row(b))


def _conv3x3_act_plus_identity(h_nhwc, x_nhwc, w_oihw, b, wi_oihw, bi, slope, id_scale):
    N, H, W, cm = h_nhwc.shape
    cin = x_nhwc.shape[3]
    cout = w_oihw.shape[0]
    hp = jnp.pad(h_nhwc, ((0, 0), (1, 1), (1, 1), (0, 0)))
    return pl.pallas_call(
        functools.partial(_conv3x3_act_plus_identity_kernel,
                          H=H, W=W, slope=slope, id_scale=id_scale),
        out_shape=jax.ShapeDtypeStruct((N, H, W, cout), jnp.float32),
        grid_spec=pltpu.PrefetchScalarGridSpec(
            num_scalar_prefetch=0,
            grid=(N,),
            in_specs=[
                pl.BlockSpec((1, H + 2, W + 2, cm), lambda n: (n, 0, 0, 0)),
                pl.BlockSpec((1, H, W, cin), lambda n: (n, 0, 0, 0)),
                pl.BlockSpec((9, cm, cout), lambda n: (0, 0, 0)),
                pl.BlockSpec((1, cout), lambda n: (0, 0)),
                pl.BlockSpec((cin, cout), lambda n: (0, 0)),
                pl.BlockSpec((1, cout), lambda n: (0, 0)),
            ],
            out_specs=pl.BlockSpec((1, H, W, cout), lambda n: (n, 0, 0, 0)),
        ),
        compiler_params=pltpu.CompilerParams(
            dimension_semantics=("parallel",), vmem_limit_bytes=_VMEM_LIMIT),
    )(hp, x_nhwc, _conv3x3_w(w_oihw), _bias_row(b), _pw_w(wi_oihw), _bias_row(bi))


def _conv_down_4x4s2(x_nhwc, w_oihw):
    """conv_down: Conv2d(C, Cout, kernel=4, stride=2, padding=1, bias=False)."""
    N, H, W, C = x_nhwc.shape
    cout = w_oihw.shape[0]
    Ho = (H + 2 - 4) // 2 + 1
    Wo = (W + 2 - 4) // 2 + 1
    xp = jnp.pad(x_nhwc, ((0, 0), (1, 1), (1, 1), (0, 0)))
    # One stacked patch array (single DMA stream) with lane-dense K = 16 * C.
    patches = [xp[:, ky::2, kx::2, :][:, :Ho, :Wo, :]
               for ky in range(4) for kx in range(4)]
    rows = jnp.concatenate(patches, axis=-1).reshape(N * Ho * Wo, 16 * C)
    w_mat = jnp.transpose(w_oihw, (2, 3, 1, 0)).reshape(16 * C, cout).astype(jnp.float32)
    zero_b = jnp.zeros((1, cout), jnp.float32)
    o = _row_matmul_call(_matmul_bias_kernel, rows, [w_mat, zero_b], cout)
    return o.reshape(N, Ho, Wo, cout)


# ---------------------------------------------------------------------------
# FFTConvBlock forward (Pallas)
# ---------------------------------------------------------------------------
def fft_conv_block_forward(x_nchw, params, *, relu_slope, downsample,
                           use_csff=False, use_FFT_PHASE=False, use_FFT_AMP=False,
                           enc=None, dec=None):
    N, cin, H, W = x_nchw.shape
    cout = params['res_w1'].shape[0]
    x = jnp.transpose(x_nchw, (0, 2, 3, 1)).astype(jnp.float32)  # NHWC

    fft_branch = (use_FFT_PHASE != use_FFT_AMP)   # torch if/elif branches
    id_scale = 1.0 if fft_branch else 2.0         # else-branch adds identity(x) twice

    # resConv[0:2]
    h1 = _conv3x3_act(x, params['res_w1'], params['res_b1'], relu_slope)
    # resConv[2:4] fused with identity 1x1 + residual adds
    out = _conv3x3_act_plus_identity(h1, x, params['res_w2'], params['res_b2'],
                                     params['id_w'], params['id_b'],
                                     relu_slope, id_scale)

    if fft_branch:
        # TODO(synk): rfft2/irfft2 have no Pallas TPU equivalent; kept as XLA ops.
        f = jnp.fft.rfft2(out, axes=(1, 2))          # over (H, W), like torch dims=(-2,-1)
        amp = jnp.abs(f)
        phase = jnp.angle(f)
        Wf = f.shape[2]
        target = phase if use_FFT_PHASE else amp
        rows = target.reshape(N * H * Wf, cout).astype(jnp.float32)
        proc = _row_matmul_call(
            functools.partial(_pw_act_pw_kernel, slope=relu_slope),
            rows,
            [_pw_w(params['fft_w1']), _bias_row(params['fft_b1']),
             _pw_w(params['fft_w2']), _bias_row(params['fft_b2'])],
            cout).reshape(N, H, Wf, cout)
        if use_FFT_PHASE:
            rec = amp * jnp.exp(1j * proc)
        else:
            rec = proc * jnp.exp(1j * phase)
        x_fft_out = jnp.fft.irfft2(rec, s=(H, W), axes=(1, 2)).astype(jnp.float32)
        cat = jnp.concatenate([out, x_fft_out], axis=-1).reshape(N * H * W, 2 * cout)
        out = _row_matmul_call(
            _matmul_bias_kernel, cat,
            [_pw_w(params['fus_w']), _bias_row(params['fus_b'])],
            cout).reshape(N, H, W, cout)

    if enc is not None and dec is not None:
        assert use_csff
        enc_h = jnp.transpose(enc, (0, 2, 3, 1)).astype(jnp.float32)
        dec_h = jnp.transpose(dec, (0, 2, 3, 1)).astype(jnp.float32)
        # slope=1.0 -> plain 3x3 conv + bias (no activation)
        out = (out
               + _conv3x3_act(enc_h, params['csff_enc_w'], params['csff_enc_b'], 1.0)
               + _conv3x3_act(dec_h, params['csff_dec_w'], params['csff_dec_b'], 1.0))

    out_nchw = jnp.transpose(out, (0, 3, 1, 2))
    if downsample:
        down = _conv_down_4x4s2(out, params['down_w'])
        return jnp.transpose(down, (0, 3, 1, 2)), out_nchw
    return out_nchw


# ---------------------------------------------------------------------------
# Pure-JAX reference (mirrors the PyTorch forward), for verification
# ---------------------------------------------------------------------------
def _conv2d_ref(x, w, b=None, stride=1, pad=0):
    out = jax.lax.conv_general_dilated(
        x.astype(jnp.float32), w.astype(jnp.float32),
        window_strides=(stride, stride),
        padding=[(pad, pad), (pad, pad)],
        dimension_numbers=('NCHW', 'OIHW', 'NCHW'),
        precision=jax.lax.Precision.HIGHEST)
    if b is not None:
        out = out + b.astype(jnp.float32)[None, :, None, None]
    return out


def fft_conv_block_reference(x, params, *, relu_slope, downsample,
                             use_FFT_PHASE=False, use_FFT_AMP=False):
    s = relu_slope
    res = _leaky(_conv2d_ref(x, params['res_w1'], params['res_b1'], 1, 1), s)
    res = _leaky(_conv2d_ref(res, params['res_w2'], params['res_b2'], 1, 1), s)
    ident = _conv2d_ref(x, params['id_w'], params['id_b'], 1, 0)
    out = res + ident
    if use_FFT_PHASE != use_FFT_AMP:
        f = jnp.fft.rfft2(out, axes=(-2, -1))
        amp = jnp.abs(f)
        ph = jnp.angle(f)
        tgt = ph if use_FFT_PHASE else amp
        tgt = _conv2d_ref(_leaky(_conv2d_ref(tgt, params['fft_w1'], params['fft_b1']), s),
                          params['fft_w2'], params['fft_b2'])
        rec = (amp * jnp.exp(1j * tgt)) if use_FFT_PHASE else (tgt * jnp.exp(1j * ph))
        xf = jnp.fft.irfft2(rec, s=out.shape[-2:], axes=(-2, -1)).astype(jnp.float32)
        out = _conv2d_ref(jnp.concatenate([out, xf], axis=1),
                          params['fus_w'], params['fus_b'])
    else:
        out = out + ident
    if downsample:
        down = _conv2d_ref(out, params['down_w'], None, 2, 1)
        return down, out
    return out


if __name__ == "__main__":
    key = jax.random.PRNGKey(0)
    ks = jax.random.split(key, 14)
    N, Cin, Cout, H, W = 2, 4, 8, 16, 16
    slope = 0.2

    def rnd(k, shape, scale=0.1):
        return jax.random.normal(k, shape, jnp.float32) * scale

    params = {
        'res_w1': rnd(ks[0], (Cout, Cin, 3, 3)), 'res_b1': rnd(ks[1], (Cout,)),
        'res_w2': rnd(ks[2], (Cout, Cout, 3, 3)), 'res_b2': rnd(ks[3], (Cout,)),
        'id_w': rnd(ks[4], (Cout, Cin, 1, 1)), 'id_b': rnd(ks[5], (Cout,)),
        'fft_w1': rnd(ks[6], (Cout, Cout, 1, 1)), 'fft_b1': rnd(ks[7], (Cout,)),
        'fft_w2': rnd(ks[8], (Cout, Cout, 1, 1)), 'fft_b2': rnd(ks[9], (Cout,)),
        'fus_w': rnd(ks[10], (Cout, 2 * Cout, 1, 1)), 'fus_b': rnd(ks[11], (Cout,)),
        'down_w': rnd(ks[12], (Cout, Cout, 4, 4)),
    }
    x = jax.random.normal(ks[13], (N, Cin, H, W), jnp.float32)

    # Path 1: default flags (no FFT branch -> identity added twice), with downsample.
    down, out = fft_conv_block_forward(x, params, relu_slope=slope, downsample=True)
    down = jax.block_until_ready(down)
    out = jax.block_until_ready(out)
    down_ref, out_ref = fft_conv_block_reference(x, params, relu_slope=slope,
                                                 downsample=True)
    assert out.shape == (N, Cout, H, W), out.shape
    assert down.shape == (N, Cout, H // 2, W // 2), down.shape
    assert jnp.allclose(out, out_ref, atol=1e-3, rtol=1e-3), \
        float(jnp.max(jnp.abs(out - out_ref)))
    assert jnp.allclose(down, down_ref, atol=1e-3, rtol=1e-3), \
        float(jnp.max(jnp.abs(down - down_ref)))

    # Path 2: FFT-amplitude branch, no downsample.
    out2 = jax.block_until_ready(
        fft_conv_block_forward(x, params, relu_slope=slope, downsample=False,
                               use_FFT_AMP=True))
    out2_ref = fft_conv_block_reference(x, params, relu_slope=slope, downsample=False,
                                        use_FFT_AMP=True)
    assert out2.shape == (N, Cout, H, W), out2.shape
    assert jnp.allclose(out2, out2_ref, atol=1e-3, rtol=1e-3), \
        float(jnp.max(jnp.abs(out2 - out2_ref)))

    print("KERNEL_OK")
</pallas_src>

<mosaic_0001>
module attributes {stable_mosaic.version = 11 : i64} {
  func.func @_conv3x3_bias_act_kernel(%arg0: i32, %arg1: memref<1x18x18x4xf32, #tpu.memory_space<vmem>>, %arg2: memref<9x4x8xf32, #tpu.memory_space<vmem>>, %arg3: memref<1x8xf32, #tpu.memory_space<vmem>>, %arg4: memref<1x16x16x8xf32, #tpu.memory_space<vmem>>) attributes {dimension_semantics = [#tpu.dimension_semantics<parallel>], iteration_bounds = array<i64: 2>, scalar_prefetch = 0 : i64, scratch_operands = 0 : i64, tpu.core_type = #tpu.core_type<tc>, window_params = [{transform_indices = @transform_0, window_bounds = array<i64: 1, 18, 18, 4>}, {pipeline_mode = #tpu.pipeline_mode<synchronous>, transform_indices = @transform_1, window_bounds = array<i64: 9, 4, 8>}, {pipeline_mode = #tpu.pipeline_mode<synchronous>, transform_indices = @transform_2, window_bounds = array<i64: 1, 8>}, {transform_indices = @transform_3, window_bounds = array<i64: 1, 16, 16, 8>}]} {
    %cst = arith.constant 0.000000e+00 : f32
    %0 = vector.broadcast %cst : f32 to vector<256x8xf32>
    %c0 = arith.constant 0 : index
    %c0_0 = arith.constant 0 : index
    %c0_1 = arith.constant 0 : index
    %c0_2 = arith.constant 0 : index
    %1 = vector.load %arg1[%c0, %c0_0, %c0_1, %c0_2] : memref<1x18x18x4xf32, #tpu.memory_space<vmem>>, vector<1x16x16x4xf32>
    %2 = vector.shape_cast %1 : vector<1x16x16x4xf32> to vector<16x16x4xf32>
    %3 = vector.shape_cast %2 : vector<16x16x4xf32> to vector<256x4xf32>
    %c0_3 = arith.constant 0 : index
    %c0_4 = arith.constant 0 : index
    %c0_5 = arith.constant 0 : index
    %4 = vector.load %arg2[%c0_3, %c0_4, %c0_5] : memref<9x4x8xf32, #tpu.memory_space<vmem>>, vector<1x4x8xf32>
    %5 = vector.shape_cast %4 : vector<1x4x8xf32> to vector<4x8xf32>
    %cst_6 = arith.constant dense<0.000000e+00> : vector<256x8xf32>
    %6 = tpu.matmul %3, %5, %cst_6 {dimension_numbers = #tpu.dot_dimension_numbers<[1], [0], [0], [1], [0, 0, 1, 1], [], []>} : vector<256x4xf32>, vector<4x8xf32>, vector<256x8xf32> -> vector<256x8xf32>
    %7 = arith.addf %0, %6 : vector<256x8xf32>
    %c0_7 = arith.constant 0 : index
    %c0_8 = arith.constant 0 : index
    %c1 = arith.constant 1 : index
    %c0_9 = arith.constant 0 : index
    %8 = vector.load %arg1[%c0_7, %c0_8, %c1, %c0_9] : memref<1x18x18x4xf32, #tpu.memory_space<vmem>>, vector<1x16x16x4xf32>
    %9 = vector.shape_cast %8 : vector<1x16x16x4xf32> to vector<16x16x4xf32>
    %10 = vector.shape_cast %9 : vector<16x16x4xf32> to vector<256x4xf32>
    %c1_10 = arith.constant 1 : index
    %c0_11 = arith.constant 0 : index
    %c0_12 = arith.constant 0 : index
    %11 = vector.load %arg2[%c1_10, %c0_11, %c0_12] : memref<9x4x8xf32, #tpu.memory_space<vmem>>, vector<1x4x8xf32>
    %12 = vector.shape_cast %11 : vector<1x4x8xf32> to vector<4x8xf32>
    %cst_13 = arith.constant dense<0.000000e+00> : vector<256x8xf32>
    %13 = tpu.matmul %10, %12, %cst_13 {dimension_numbers = #tpu.dot_dimension_numbers<[1], [0], [0], [1], [0, 0, 1, 1], [], []>} : vector<256x4xf32>, vector<4x8xf32>, vector<256x8xf32> -> vector<256x8xf32>
    %14 = arith.addf %7, %13 : vector<256x8xf32>
    %c0_14 = arith.constant 0 : index
    %c0_15 = arith.constant 0 : index
    %c2 = arith.constant 2 : index
    %c0_16 = arith.constant 0 : index
    %15 = vector.load %arg1[%c0_14, %c0_15, %c2, %c0_16] : memref<1x18x18x4xf32, #tpu.memory_space<vmem>>, vector<1x16x16x4xf32>
    %16 = vector.shape_cast %15 : vector<1x16x16x4xf32> to vector<16x16x4xf32>
    %17 = vector.shape_cast %16 : vector<16x16x4xf32> to vector<256x4xf32>
    %c2_17 = arith.constant 2 : index
    %c0_18 = arith.constant 0 : index
    %c0_19 = arith.constant 0 : index
    %18 = vector.load %arg2[%c2_17, %c0_18, %c0_19] : memref<9x4x8xf32, #tpu.memory_space<vmem>>, vector<1x4x8xf32>
    %19 = vector.shape_cast %18 : vector<1x4x8xf32> to vector<4x8xf32>
    %cst_20 = arith.constant dense<0.000000e+00> : vector<256x8xf32>
    %20 = tpu.matmul %17, %19, %cst_20 {dimension_numbers = #tpu.dot_dimension_numbers<[1], [0], [0], [1], [0, 0, 1, 1], [], []>} : vector<256x4xf32>, vector<4x8xf32>, vector<256x8xf32> -> vector<256x8xf32>
    %21 = arith.addf %14, %20 : vector<256x8xf32>
    %c0_21 = arith.constant 0 : index
    %c1_22 = arith.constant 1 : index
    %c0_23 = arith.constant 0 : index
    %c0_24 = arith.constant 0 : index
    %22 = vector.load %arg1[%c0_21, %c1_22, %c0_23, %c0_24] : memref<1x18x18x4xf32, #tpu.memory_space<vmem>>, vector<1x16x16x4xf32>
    %23 = vector.shape_cast %22 : vector<1x16x16x4xf32> to vector<16x16x4xf32>
    %24 = vector.shape_cast %23 : vector<16x16x4xf32> to vector<256x4xf32>
    %c3 = arith.constant 3 : index
    %c0_25 = arith.constant 0 : index
    %c0_26 = arith.constant 0 : index
    %25 = vector.load %arg2[%c3, %c0_25, %c0_26] : memref<9x4x8xf32, #tpu.memory_space<vmem>>, vector<1x4x8xf32>
    %26 = vector.shape_cast %25 : vector<1x4x8xf32> to vector<4x8xf32>
    %cst_27 = arith.constant dense<0.000000e+00> : vector<256x8xf32>
    %27 = tpu.matmul %24, %26, %cst_27 {dimension_numbers = #tpu.dot_dimension_numbers<[1], [0], [0], [1], [0, 0, 1, 1], [], []>} : vector<256x4xf32>, vector<4x8xf32>, vector<256x8xf32> -> vector<256x8xf32>
    %28 = arith.addf %21, %27 : vector<256x8xf32>
    %c0_28 = arith.constant 0 : index
    %c1_29 = arith.constant 1 : index
    %c1_30 = arith.constant 1 : index
    %c0_31 = arith.constant 0 : index
    %29 = vector.load %arg1[%c0_28, %c1_29, %c1_30, %c0_31] : memref<1x18x18x4xf32, #tpu.memory_space<vmem>>, vector<1x16x16x4xf32>
    %30 = vector.shape_cast %29 : vector<1x16x16x4xf32> to vector<16x16x4xf32>
    %31 = vector.shape_cast %30 : vector<16x16x4xf32> to vector<256x4xf32>
    %c4 = arith.constant 4 : index
    %c0_32 = arith.constant 0 : index
    %c0_33 = arith.constant 0 : index
    %32 = vector.load %arg2[%c4, %c0_32, %c0_33] : memref<9x4x8xf32, #tpu.memory_space<vmem>>, vector<1x4x8xf32>
    %33 = vector.shape_cast %32 : vector<1x4x8xf32> to vector<4x8xf32>
    %cst_34 = arith.constant dense<0.000000e+00> : vector<256x8xf32>
    %34 = tpu.matmul %31, %33, %cst_34 {dimension_numbers = #tpu.dot_dimension_numbers<[1], [0], [0], [1], [0, 0, 1, 1], [], []>} : vector<256x4xf32>, vector<4x8xf32>, vector<256x8xf32> -> vector<256x8xf32>
    %35 = arith.addf %28, %34 : vector<256x8xf32>
    %c0_35 = arith.constant 0 : index
    %c1_36 = arith.constant 1 : index
    %c2_37 = arith.constant 2 : index
    %c0_38 = arith.constant 0 : index
    %36 = vector.load %arg1[%c0_35, %c1_36, %c2_37, %c0_38] : memref<1x18x18x4xf32, #tpu.memory_space<vmem>>, vector<1x16x16x4xf32>
    %37 = vector.shape_cast %36 : vector<1x16x16x4xf32> to vector<16x16x4xf32>
    %38 = vector.shape_cast %37 : vector<16x16x4xf32> to vector<256x4xf32>
    %c5 = arith.constant 5 : index
    %c0_39 = arith.constant 0 : index
    %c0_40 = arith.constant 0 : index
    %39 = vector.load %arg2[%c5, %c0_39, %c0_40] : memref<9x4x8xf32, #tpu.memory_space<vmem>>, vector<1x4x8xf32>
    %40 = vector.shape_cast %39 : vector<1x4x8xf32> to vector<4x8xf32>
    %cst_41 = arith.constant dense<0.000000e+00> : vector<256x8xf32>
    %41 = tpu.matmul %38, %40, %cst_41 {dimension_numbers = #tpu.dot_dimension_numbers<[1], [0], [0], [1], [0, 0, 1, 1], [], []>} : vector<256x4xf32>, vector<4x8xf32>, vector<256x8xf32> -> vector<256x8xf32>
    %42 = arith.addf %35, %41 : vector<256x8xf32>
    %c0_42 = arith.constant 0 : index
    %c2_43 = arith.constant 2 : index
    %c0_44 = arith.constant 0 : index
    %c0_45 = arith.constant 0 : index
    %43 = vector.load %arg1[%c0_42, %c2_43, %c0_44, %c0_45] : memref<1x18x18x4xf32, #tpu.memory_space<vmem>>, vector<1x16x16x4xf32>
    %44 = vector.shape_cast %43 : vector<1x16x16x4xf32> to vector<16x16x4xf32>
    %45 = vector.shape_cast %44 : vector<16x16x4xf32> to vector<256x4xf32>
    %c6 = arith.constant 6 : index
    %c0_46 = arith.constant 0 : index
    %c0_47 = arith.constant 0 : index
    %46 = vector.load %arg2[%c6, %c0_46, %c0_47] : memref<9x4x8xf32, #tpu.memory_space<vmem>>, vector<1x4x8xf32>
    %47 = vector.shape_cast %46 : vector<1x4x8xf32> to vector<4x8xf32>
    %cst_48 = arith.constant dense<0.000000e+00> : vector<256x8xf32>
    %48 = tpu.matmul %45, %47, %cst_48 {dimension_numbers = #tpu.dot_dimension_numbers<[1], [0], [0], [1], [0, 0, 1, 1], [], []>} : vector<256x4xf32>, vector<4x8xf32>, vector<256x8xf32> -> vector<256x8xf32>
    %49 = arith.addf %42, %48 : vector<256x8xf32>
    %c0_49 = arith.constant 0 : index
    %c2_50 = arith.constant 2 : index
    %c1_51 = arith.constant 1 : index
    %c0_52 = arith.constant 0 : index
    %50 = vector.load %arg1[%c0_49, %c2_50, %c1_51, %c0_52] : memref<1x18x18x4xf32, #tpu.memory_space<vmem>>, vector<1x16x16x4xf32>
    %51 = vector.shape_cast %50 : vector<1x16x16x4xf32> to vector<16x16x4xf32>
    %52 = vector.shape_cast %51 : vector<16x16x4xf32> to vector<256x4xf32>
    %c7 = arith.constant 7 : index
    %c0_53 = arith.constant 0 : index
    %c0_54 = arith.constant 0 : index
    %53 = vector.load %arg2[%c7, %c0_53, %c0_54] : memref<9x4x8xf32, #tpu.memory_space<vmem>>, vector<1x4x8xf32>
    %54 = vector.shape_cast %53 : vector<1x4x8xf32> to vector<4x8xf32>
    %cst_55 = arith.constant dense<0.000000e+00> : vector<256x8xf32>
    %55 = tpu.matmul %52, %54, %cst_55 {dimension_numbers = #tpu.dot_dimension_numbers<[1], [0], [0], [1], [0, 0, 1, 1], [], []>} : vector<256x4xf32>, vector<4x8xf32>, vector<256x8xf32> -> vector<256x8xf32>
    %56 = arith.addf %49, %55 : vector<256x8xf32>
    %c0_56 = arith.constant 0 : index
    %c2_57 = arith.constant 2 : index
    %c2_58 = arith.constant 2 : index
    %c0_59 = arith.constant 0 : index
    %57 = vector.load %arg1[%c0_56, %c2_57, %c2_58, %c0_59] : memref<1x18x18x4xf32, #tpu.memory_space<vmem>>, vector<1x16x16x4xf32>
    %58 = vector.shape_cast %57 : vector<1x16x16x4xf32> to vector<16x16x4xf32>
    %59 = vector.shape_cast %58 : vector<16x16x4xf32> to vector<256x4xf32>
    %c8 = arith.constant 8 : index
    %c0_60 = arith.constant 0 : index
    %c0_61 = arith.constant 0 : index
    %60 = vector.load %arg2[%c8, %c0_60, %c0_61] : memref<9x4x8xf32, #tpu.memory_space<vmem>>, vector<1x4x8xf32>
    %61 = vector.shape_cast %60 : vector<1x4x8xf32> to vector<4x8xf32>
    %cst_62 = arith.constant dense<0.000000e+00> : vector<256x8xf32>
    %62 = tpu.matmul %59, %61, %cst_62 {dimension_numbers = #tpu.dot_dimension_numbers<[1], [0], [0], [1], [0, 0, 1, 1], [], []>} : vector<256x4xf32>, vector<4x8xf32>, vector<256x8xf32> -> vector<256x8xf32>
    %63 = arith.addf %56, %62 : vector<256x8xf32>
    %c0_63 = arith.constant 0 : index
    %c0_64 = arith.constant 0 : index
    %64 = vector.load %arg3[%c0_63, %c0_64] : memref<1x8xf32, #tpu.memory_space<vmem>>, vector<1x8xf32>
    %65 = vector.broadcast %64 : vector<1x8xf32> to vector<256x8xf32>
    %66 = arith.addf %63, %65 : vector<256x8xf32>
    %cst_65 = arith.constant 0.000000e+00 : f32
    %67 = vector.broadcast %cst_65 : f32 to vector<256x8xf32>
    %68 = arith.cmpf oge, %66, %67 : vector<256x8xf32>
    %cst_66 = arith.constant 2.000000e-01 : f32
    %69 = vector.broadcast %cst_66 : f32 to vector<256x8xf32>
    %70 = arith.mulf %69, %66 : vector<256x8xf32>
    %71 = arith.select %68, %66, %70 : vector<256x8xi1>, vector<256x8xf32>
    %72 = vector.shape_cast %71 : vector<256x8xf32> to vector<16x16x8xf32>
    %c0_67 = arith.constant 0 : index
    %c0_68 = arith.constant 0 : index
    %c0_69 = arith.constant 0 : index
    %c0_70 = arith.constant 0 : index
    %73 = vector.load %arg4[%c0_67, %c0_68, %c0_69, %c0_70] : memref<1x16x16x8xf32, #tpu.memory_space<vmem>>, vector<1x16x16x8xf32>
    %74 = vector.shape_cast %73 : vector<1x16x16x8xf32> to vector<16x16x8xf32>
    %75 = vector.shape_cast %72 : vector<16x16x8xf32> to vector<1x16x16x8xf32>
    tpu.vector_store %arg4[%c0_67, %c0_68, %c0_69, %c0_70], %75 {strides = array<i32>} : memref<1x16x16x8xf32, #tpu.memory_space<vmem>>, vector<1x16x16x8xf32>,
    return
  }
  func.func @transform_0(%arg0: i32) -> (i32, i32, i32, i32) {
    %c0_i32 = arith.constant 0 : i32
    %c0_i32_0 = arith.constant 0 : i32
    %c0_i32_1 = arith.constant 0 : i32
    %c0_i32_2 = arith.constant 0 : i32
    return %arg0, %c0_i32, %c0_i32_0, %c0_i32_1 : i32, i32, i32, i32
  }
  func.func @transform_1(%arg0: i32) -> (i32, i32, i32) {
    %c0_i32 = arith.constant 0 : i32
    %c0_i32_0 = arith.constant 0 : i32
    %c0_i32_1 = arith.constant 0 : i32
    %c0_i32_2 = arith.constant 0 : i32
    return %c0_i32, %c0_i32_0, %c0_i32_1 : i32, i32, i32
  }
  func.func @transform_2(%arg0: i32) -> (i32, i32) {
    %c0_i32 = arith.constant 0 : i32
    %c0_i32_0 = arith.constant 0 : i32
    %c0_i32_1 = arith.constant 0 : i32
    return %c0_i32, %c0_i32_0 : i32, i32
  }
  func.func @transform_3(%arg0: i32) -> (i32, i32, i32, i32) {
    %c0_i32 = arith.constant 0 : i32
    %c0_i32_0 = arith.constant 0 : i32
    %c0_i32_1 = arith.constant 0 : i32
    %c0_i32_2 = arith.constant 0 : i32
    return %arg0, %c0_i32, %c0_i32_0, %c0_i32_1 : i32, i32, i32, i32
  }
}

</mosaic_0001>

<bundles_post_ra>
// kernel: tpu_custom_call.1
= control target key start
LH: loop header
LB: loop body
LE: loop exit
PB: predicated region body
PF: predicated region fallthrough
CT: control target
= control target key end

     0   :  { %s3381_s12 = smov 0   ;;  %s4522_s0 = inlined_call_operand.vmem [shape: f32[2,18,18,4], index: 0, kind: input, shape index: {}]   ;;  %s4523_s1 = inlined_call_operand.vmem [shape: f32[9,4,8], index: 1, kind: input, shape index: {}]   ;;  %s4524_s2 = inlined_call_operand.vmem [shape: f32[1,8], index: 2, kind: input, shape index: {}]   ;;  %s4525_s3 = inlined_call_operand.vmem [shape: f32[2,16,16,8], index: 3, kind: output, shape index: {}]  }
   0x1 LB: > { %s2832_s13 = sadd.s32 4294967295, %s3359_s12   ;;  %p2836_p0 = scmp.ge.s32.totalorder %s3359_s12, 1  ;;  %s3359_s12 = sphi %s3381_s12, %s13_s12  }
   0x2   : > { %p137_p1 = scmp.lt.s32.totalorder %s3359_s12, 3 }
   0x4   : > { %p138_p2 = pnand %p2836_p0, %p137_p1 }
   0x6   : > { %141 = sbr.rel (%p138_p2) target bundleno = 731 (0x2db), region = 32 }
   0xb   : > { %v2840_v0 = vld [vmem:[%s4523_s1 + $0x4] sm:$0xf]  ;;  %vm335_vm0 = vcmask 1043456   ;;  %p161_p3 = scmp.lt.s32.totalorder %s2832_s13, 1  ;;  %v2907_v1 = vld [vmem:[%s4523_s1 + $0x8] sm:$0xf] }
   0xc   : > { %3340 = vmatpush.msk.msra.mxu1 %vm335_vm0, %v2840_v0  ;;  %3341 = vmatpush.msk.msra.mxu2 %vm335_vm0, %v2840_v0  ;;  %v2973_v2 = vld [vmem:[%s4523_s1 + $0xc] sm:$0xf]  ;;  %v203_v3 = vld [vmem:[%s4523_s1] sm:$0xf]  ;;  %v3039_v4 = vld [vmem:[%s4523_s1 + $0x10] sm:$0xf] }
   0xd   : > { %s4625_s13 = smov (!%p161_p3, %s2832_s13), 1  ;;  %3342 = vmatpush.msk.msra.mxu3 %vm335_vm0, %v2840_v0  ;;  %2841 = vmatpush.msk.msra.mxu0 %vm335_vm0, %v2840_v0  ;;  %vm238_vm1 = vcmask 31744   ;;  %v3171_v25 = vld [vmem:[%s4523_s1 + $0x18] sm:$0xf]  ;;  %v3237_v26 = vld [vmem:[%s4523_s1 + $0x1c] sm:$0xf] }
   0xe   : > { %2908 = vmatpush.msk.msrb.mxu2 %vm335_vm0, %v2907_v1  ;;  %2874 = vmatpush.msk.msrb.mxu1 %vm335_vm0, %v203_v3  ;;  %s3343_s24 = smul.u32 432, %s4625_s13  ;;  %v3105_v27 = vld [vmem:[%s4523_s1 + $0x14] sm:$0xf]  ;;  %v3303_v32 = vld [vmem:[%s4523_s1 + $0x20] sm:$0xf]  ;;  %s3339_s11 = sshll.u32 %s4625_s13, 8 }
   0xf   : > { %2974 = vmatpush.msk.msrb.mxu3 %vm335_vm0, %v2973_v2  ;;  %3040 = vmatpush.msk.msrb.mxu0 %vm335_vm0, %v3039_v4  ;;  %s4287_s16 = scalar_lea.vmem %s4525_s3, %s3339_s11  ;;  %vm2744_vm3 = vcmask 64512  }
  0x10   : > { %s3418_s27 = scalar_lea.vmem %s4522_s0, %s3343_s24 }
  0x11   : > { %v3421_v5 = vld [vmem:[%s3418_s27 + $0x61] sm:$0xff]  ;;  %v3438_v9 = vld [vmem:[%s3418_s27 + $0x69] sm:$0xff]  ;;  %v3455_v13 = vld [vmem:[%s3418_s27 + $0x79] sm:$0xff] }
  0x12   : > { %v3424_v6 = vld [vmem:[%s3418_s27 + $0xc1] sm:$0xff]  ;;  %2850 = vmatmul.msk.f32.vlgmr.msra.gmra.mxu1 %vm238_vm1, %v3421_v5  ;;  %v3441_v10 = vld [vmem:[%s3418_s27 + $0xc9] sm:$0xff]  ;;  %v3458_v14 = vld [vmem:[%s3418_s27 + $0xd9] sm:$0xff] }
  0x13   : > { %v3427_v7 = vld [vmem:[%s3418_s27 + $0x121] sm:$0xff]  ;;  %2858 = vmatmul.msk.f32.vlgmr.msra.gmra.mxu2 %vm238_vm1, %v3424_v6  ;;  %v3444_v11 = vld [vmem:[%s3418_s27 + $0x129] sm:$0xff]  ;;  %v3461_v15 = vld [vmem:[%s3418_s27 + $0x139] sm:$0xff]  ;;  %3106 = vmatpush.msk.msra.mxu1 %vm335_vm0, %v3105_v27 }
  0x14   : > { %v204_v8 = vld [vmem:[%s3418_s27 + $0x1] sm:$0xff]  ;;  %2866 = vmatmul.msk.f32.vlgmr.msra.gmra.mxu3 %vm238_vm1, %v3427_v7  ;;  %v205_v12 = vld [vmem:[%s3418_s27 + $0x9] sm:$0xff]  ;;  %v206_v16 = vld [vmem:[%s3418_s27 + $0x19] sm:$0xff]  ;;  %3172 = vmatpush.msk.msra.mxu2 %vm335_vm0, %v3171_v25 }
  0x15   : > { %2842 = vmatmul.msk.f32.vlgmr.msra.gmra.mxu0 %vm238_vm1, %v204_v8  ;;  %v3472_v17 = vld [vmem:[%s3418_s27 + $0x81] sm:$0xff]  ;;  %v3489_v21 = vld [vmem:[%s3418_s27 + $0x91] sm:$0xff]  ;;  %3238 = vmatpush.msk.msra.mxu3 %vm335_vm0, %v3237_v26  ;;  %v3521_v28 = vld [vmem:[%s3418_s27 + $0x99] sm:$0xff] }
  0x16   : > { %v3475_v18 = vld [vmem:[%s3418_s27 + $0xe1] sm:$0xff]  ;;  %v3492_v22 = vld [vmem:[%s3418_s27 + $0xf1] sm:$0xff]  ;;  %v3524_v29 = vld [vmem:[%s3418_s27 + $0xf9] sm:$0xff]  ;;  %3304 = vmatpush.msk.msra.mxu0 %vm335_vm0, %v3303_v32 }
  0x17   : > { %v3478_v19 = vld [vmem:[%s3418_s27 + $0x141] sm:$0xff]  ;;  %v3495_v23 = vld [vmem:[%s3418_s27 + $0x151] sm:$0xff]  ;;  %v3527_v30 = vld [vmem:[%s3418_s27 + $0x159] sm:$0xff] }
  0x18   : > { %v207_v20 = vld [vmem:[%s3418_s27 + $0x21] sm:$0xff]  ;;  %v3498_v24 = vld [vmem:[%s3418_s27 + $0x31] sm:$0xff]  ;;  %v3530_v31 = vld [vmem:[%s3418_s27 + $0x39] sm:$0xff] }
  0x19   : > { %v3545_v33 = vld [vmem:[%s3418_s27 + $0xa9] sm:$0xff]  ;;  %v3565_v37 = vld [vmem:[%s3418_s27 + $0xb1] sm:$0xff]  ;;  %v171_v41 = vld [vmem:[%s3418_s27] sm:$0xff] }
  0x1a   : > { %2851 = vmatmul.msk.f32.gmra.mxu1 %vm238_vm1, %v3438_v9  ;;  %v3548_v34 = vld [vmem:[%s3418_s27 + $0x109] sm:$0xff]  ;;  %v3568_v38 = vld [vmem:[%s3418_s27 + $0x111] sm:$0xff]  ;;  %v2942_v46 = vld [vmem:[%s3418_s27 + $0x20] sm:$0xff] }
  0x1b   : > { %2859 = vmatmul.msk.f32.gmra.mxu2 %vm238_vm1, %v3441_v10  ;;  %v3551_v35 = vld [vmem:[%s3418_s27 + $0x169] sm:$0xff]  ;;  %v3571_v39 = vld [vmem:[%s3418_s27 + $0x171] sm:$0xff]  ;;  %v3599_v47 = vld [vmem:[%s3418_s27 + $0x1a] sm:$0xff] }
  0x1c   : > { %2867 = vmatmul.msk.f32.gmra.mxu3 %vm238_vm1, %v3444_v11  ;;  %v3554_v36 = vld [vmem:[%s3418_s27 + $0x49] sm:$0xff]  ;;  %v3574_v40 = vld [vmem:[%s3418_s27 + $0x51] sm:$0xff]  ;;  %v3639_v53 = vld [vmem:[%s3418_s27 + $0x3a] sm:$0xff] }
  0x1d   : > { %2843 = vmatmul.msk.f32.gmra.mxu0 %vm238_vm1, %v205_v12  ;;  %v664_v42 = vld [vmem:[%s3418_s27 + $0x2] sm:$0xff]  ;;  %v2941_v43 = vld [vmem:[%s3418_s27 + $0x18] sm:$0xff]  ;;  %v665_v45 = vld [vmem:[%s3418_s27 + $0xa] sm:$0xff] }
  0x1e   : > { %v172_v44 = vld [vmem:[%s3418_s27 + $0x8] sm:$0xff]  ;;  %v3602_v48 = vld [vmem:[%s3418_s27 + $0x30] sm:$0xff]  ;;  %v3615_v50 = vld [vmem:[%s3418_s27 + $0x38] sm:$0xff] }
  0x1f   : > { %v3612_v49 = vld [vmem:[%s3418_s27 + $0x22] sm:$0xff]  ;;  %v3625_v51 = vld [vmem:[%s3418_s27 + $0x32] sm:$0xff]  ;;  %v3653_v55 = vld [vmem:[%s3418_s27 + $0x4a] sm:$0xff] }
  0x20   : > { %v3628_v52 = vld [vmem:[%s3418_s27 + $0x48] sm:$0xff]  ;;  %v3642_v54 = vld [vmem:[%s3418_s27 + $0x50] sm:$0xff]  ;;  %v3656_v56 = vld [vmem:[%s3418_s27 + $0x60] sm:$0xff] }
  0x21   : > { %v3667_v57 = vld [vmem:[%s3418_s27 + $0x52] sm:$0xff]  ;;  %v3670_v58 = vld [vmem:[%s3418_s27 + $0x68] sm:$0xff]  ;;  %v3708_v3 = vld [vmem:[%s3418_s27 + $0x80] sm:$0xff] }
  0x22   : > { %2852 = vmatmul.msk.f32.gmra.mxu1 %vm238_vm1, %v3455_v13  ;;  %4550 = vst [vmem:[#allocation2_spill] sm:$0xff] %v3670_v58  ;;  %v3683_v60 = vld [vmem:[%s3418_s27 + $0x62] sm:$0xff]  ;;  %v3686_v61 = vld [vmem:[%s3418_s27 + $0x78] sm:$0xff]  ;;  %v3705_v2 = vld [vmem:[%s3418_s27 + $0x6a] sm:$0xff] }
  0x23   : > { %2860 = vmatmul.msk.f32.gmra.mxu2 %vm238_vm1, %v3458_v14  ;;  %4551 = vst [vmem:[#allocation3_spill] sm:$0xff] %v3686_v61  ;;  %v3727_v12 = vld [vmem:[%s3418_s27 + $0x7a] sm:$0xff]  ;;  %v3749_v26 = vld [vmem:[%s3418_s27 + $0x82] sm:$0xff] }
  0x24   : > { %2868 = vmatmul.msk.f32.gmra.mxu3 %vm238_vm1, %v3461_v15  ;;  %4553 = vst [vmem:[#allocation5_spill] sm:$0xff] %v3705_v2  ;;  %v3752_v27 = vld [vmem:[%s3418_s27 + $0x98] sm:$0xff] }
  0x25   : > { %2844 = vmatmul.msk.f32.gmra.mxu0 %vm238_vm1, %v206_v16  ;;  %4554 = vst [vmem:[#allocation6_spill] sm:$0xff] %v3708_v3 }
  0x26   : > { %4556 = vst [vmem:[#allocation8_spill] sm:$0xff] %v3727_v12 }
  0x27   : > { %4559 = vst [vmem:[#allocation11_spill] sm:$0xff] %v3749_v26 }
  0x28   : > { %4560 = vst [vmem:[#allocation12_spill] sm:$0xff] %v3752_v27 }
  0x2a   : > { %2853 = vmatmul.msk.f32.gmra.mxu1 %vm238_vm1, %v3472_v17 }
  0x2b   : > { %2861 = vmatmul.msk.f32.gmra.mxu2 %vm238_vm1, %v3475_v18 }
  0x2c   : > { %2869 = vmatmul.msk.f32.gmra.mxu3 %vm238_vm1, %v3478_v19 }
  0x2d   : > { %2845 = vmatmul.msk.f32.gmra.mxu0 %vm238_vm1, %v207_v20 }
  0x32   : > { %2854 = vmatmul.msk.f32.gmra.mxu1 %vm238_vm1, %v3489_v21 }
  0x33   : > { %2862 = vmatmul.msk.f32.gmra.mxu2 %vm238_vm1, %v3492_v22 }
  0x34   : > { %2870 = vmatmul.msk.f32.gmra.mxu3 %vm238_vm1, %v3495_v23 }
  0x35   : > { %2846 = vmatmul.msk.f32.gmra.mxu0 %vm238_vm1, %v3498_v24 }
  0x3a   : > { %2855 = vmatmul.msk.f32.gmra.mxu1 %vm238_vm1, %v3521_v28 }
  0x3b   : > { %2863 = vmatmul.msk.f32.gmra.mxu2 %vm238_vm1, %v3524_v29 }
  0x3c   : > { %2871 = vmatmul.msk.f32.gmra.mxu3 %vm238_vm1, %v3527_v30 }
  0x3d   : > { %2847 = vmatmul.msk.f32.gmra.mxu0 %vm238_vm1, %v3530_v31 }
  0x42   : > { %2856 = vmatmul.msk.f32.gmra.mxu1 %vm238_vm1, %v3545_v33 }
  0x43   : > { %2864 = vmatmul.msk.f32.gmra.mxu2 %vm238_vm1, %v3548_v34 }
  0x44   : > { %2872 = vmatmul.msk.f32.gmra.mxu3 %vm238_vm1, %v3551_v35 }
  0x45   : > { %2848 = vmatmul.msk.f32.gmra.mxu0 %vm238_vm1, %v3554_v36 }
  0x4a   : > { %2857 = vmatmul.msk.f32.gmra.mxu1 %vm238_vm1, %v3565_v37 }
  0x4b   : > { %2865 = vmatmul.msk.f32.gmra.mxu2 %vm238_vm1, %v3568_v38 }
  0x4c   : > { %2873 = vmatmul.msk.f32.gmra.mxu3 %vm238_vm1, %v3571_v39 }
  0x4d   : > { %2849 = vmatmul.msk.f32.gmra.mxu0 %vm238_vm1, %v3574_v40 }
  0x52   : > { %2875 = vmatmul.msk.f32.vlgmr.msrb.gmra.mxu1 %vm238_vm1, %v171_v41 }
  0x53   : > { %2909 = vmatmul.msk.f32.vlgmr.msrb.gmra.mxu2 %vm238_vm1, %v664_v42 }
  0x54   : > { %2975 = vmatmul.msk.f32.vlgmr.msrb.gmra.mxu3 %vm238_vm1, %v2941_v43 }
  0x55   : > { %3041 = vmatmul.msk.f32.vlgmr.msrb.gmra.mxu0 %vm238_vm1, %v206_v16 }
  0x5a   : > { %2876 = vmatmul.msk.f32.gmra.mxu1 %vm238_vm1, %v172_v44  ;;  %v3774_v44 = vld [vmem:[%s3418_s27 + $0xa8] sm:$0xff] }
  0x5b   : > { %2910 = vmatmul.msk.f32.gmra.mxu2 %vm238_vm1, %v665_v45  ;;  %4563 = vst [vmem:[#allocation15_spill] sm:$0xff] %v3774_v44 }
  0x5c   : > { %2976 = vmatmul.msk.f32.gmra.mxu3 %vm238_vm1, %v2942_v46 }
  0x5d   : > { %3042 = vmatmul.msk.f32.gmra.mxu0 %vm238_vm1, %v207_v20 }
  0x62   : > { %2877 = vmatmul.msk.f32.gmra.mxu1 %vm238_vm1, %v2941_v43  ;;  %v3771_v43 = vld [vmem:[%s3418_s27 + $0x92] sm:$0xff] }
  0x63   : > { %2911 = vmatmul.msk.f32.gmra.mxu2 %vm238_vm1, %v3599_v47  ;;  %4562 = vst [vmem:[#allocation14_spill] sm:$0xff] %v3771_v43 }
  0x64   : > { %2977 = vmatmul.msk.f32.gmra.mxu3 %vm238_vm1, %v3602_v48 }
  0x65   : > { %3043 = vmatmul.msk.f32.gmra.mxu0 %vm238_vm1, %v3498_v24 }
  0x6a   : > { %2878 = vmatmul.msk.f32.gmra.mxu1 %vm238_vm1, %v2942_v46 }
  0x6b   : > { %2912 = vmatmul.msk.f32.gmra.mxu2 %vm238_vm1, %v3612_v49 }
  0x6c   : > { %2978 = vmatmul.msk.f32.gmra.mxu3 %vm238_vm1, %v3615_v50 }
  0x6d   : > { %3044 = vmatmul.msk.f32.gmra.mxu0 %vm238_vm1, %v3530_v31 }
  0x72   : > { %2879 = vmatmul.msk.f32.gmra.mxu1 %vm238_vm1, %v3602_v48 }
  0x73   : > { %2913 = vmatmul.msk.f32.gmra.mxu2 %vm238_vm1, %v3625_v51 }
  0x74   : > { %2979 = vmatmul.msk.f32.gmra.mxu3 %vm238_vm1, %v3628_v52 }
  0x75   : > { %3045 = vmatmul.msk.f32.gmra.mxu0 %vm238_vm1, %v3554_v36 }
  0x7a   : > { %2880 = vmatmul.msk.f32.gmra.mxu1 %vm238_vm1, %v3615_v50 }
  0x7b   : > { %2914 = vmatmul.msk.f32.gmra.mxu2 %vm238_vm1, %v3639_v53 }
  0x7c   : > { %2980 = vmatmul.msk.f32.gmra.mxu3 %vm238_vm1, %v3642_v54 }
  0x7d   : > { %3046 = vmatmul.msk.f32.gmra.mxu0 %vm238_vm1, %v3574_v40 }
  0x82   : > { %2881 = vmatmul.msk.f32.gmra.mxu1 %vm238_vm1, %v3628_v52 }
  0x83   : > { %2915 = vmatmul.msk.f32.gmra.mxu2 %vm238_vm1, %v3653_v55 }
  0x84   : > { %2981 = vmatmul.msk.f32.gmra.mxu3 %vm238_vm1, %v3656_v56 }
  0x85   : > { %3047 = vmatmul.msk.f32.gmra.mxu0 %vm238_vm1, %v3421_v5 }
  0x8a   : > { %2882 = vmatmul.msk.f32.gmra.mxu1 %vm238_vm1, %v3642_v54 }
  0x8b   : > { %2916 = vmatmul.msk.f32.gmra.mxu2 %vm238_vm1, %v3667_v57 }
  0x8c   : > { %2982 = vmatmul.msk.f32.gmra.mxu3 %vm238_vm1, %v3670_v58 }
  0x8d   : > { %3048 = vmatmul.msk.f32.gmra.mxu0 %vm238_vm1, %v3438_v9 }
  0x8f   : > { %v3680_v59 = vpop.f32.mrf.mxu1 }
  0x92   : > { %v3688_v62 = vpop.f32.mrf.mxu0  ;;  %2883 = vmatmul.msk.f32.gmra.mxu1 %vm238_vm1, %v3656_v56 }
  0x93   : > { %2917 = vmatmul.msk.f32.gmra.mxu2 %vm238_vm1, %v3683_v60 }
  0x94   : > { %2983 = vmatmul.msk.f32.gmra.mxu3 %vm238_vm1, %v3686_v61 }
  0x95   : > { %3049 = vmatmul.msk.f32.gmra.mxu0 %vm238_vm1, %v3455_v13  ;;  %v3730_v13 = vld [vmem:[%s3418_s27 + $0x90] sm:$0xff] }
  0x96   : > { %v3698_v63 = vpop.f32.mrf.mxu2  ;;  %4557 = vst [vmem:[#allocation9_spill] sm:$0xff] %v3730_v13 }
  0x97   : > { %v3700_v0 = vpop.f32.mrf.mxu3  ;;  %v3702_v1 = vpop.f32.mrf.mxu1 }
  0x98   : > { %4552 = vst [vmem:[#allocation4_spill] sm:$0xff] %v3700_v0 }
  0x9a   : > { %v3710_v4 = vpop.f32.mrf.mxu0  ;;  %2884 = vmatmul.msk.f32.gmra.mxu1 %vm238_vm1, %v3670_v58  ;;  %v3875_v58 = vld [vmem:[%s3418_s27 + $0xe0] sm:$0xff] }
  0x9b   : > { %2918 = vmatmul.msk.f32.gmra.mxu2 %vm238_vm1, %v3705_v2  ;;  %v3872_v2 = vld [vmem:[%s3418_s27 + $0xca] sm:$0xff] }
  0x9c   : > { %2984 = vmatmul.msk.f32.gmra.mxu3 %vm238_vm1, %v3708_v3 }
  0x9d   : > { %3050 = vmatmul.msk.f32.gmra.mxu0 %vm238_vm1, %v3472_v17 }
  0x9e   : > { %v3720_v5 = vpop.f32.mrf.mxu2 }
  0x9f   : > { %v3722_v8 = vpop.f32.mrf.mxu3  ;;  %v3724_v9 = vpop.f32.mrf.mxu1 }
  0xa0   : > { %4555 = vst [vmem:[#allocation7_spill] sm:$0xff] %v3722_v8  ;;  %v3796_v8 = vld [vmem:[%s3418_s27 + $0xb0] sm:$0xff] }
  0xa1   : > { %4567 = vst [vmem:[#allocation19_spill] sm:$0xff] %v3796_v8 }
  0xa2   : > { %v3732_v16 = vpop.f32.mrf.mxu0  ;;  %2885 = vmatmul.msk.f32.gmra.mxu1 %vm238_vm1, %v3686_v61  ;;  %v3860_v61 = vld [vmem:[%s3418_s27 + $0xd8] sm:$0xff] }
  0xa3   : > { %2919 = vmatmul.msk.f32.gmra.mxu2 %vm238_vm1, %v3727_v12 }
  0xa4   : > { %2985 = vmatmul.msk.f32.gmra.mxu3 %vm238_vm1, %v3730_v13 }
  0xa5   : > { %3051 = vmatmul.msk.f32.gmra.mxu0 %vm238_vm1, %v3489_v21 }
  0xa6   : > { %v3742_v17 = vpop.f32.mrf.mxu2 }
  0xa7   : > { %v3744_v20 = vpop.f32.mrf.mxu3  ;;  %v3746_v25 = vpop.f32.mrf.mxu1 }
  0xa8   : > { %4558 = vst [vmem:[#allocation10_spill] sm:$0xff] %v3744_v20  ;;  %v3793_v20 = vld [vmem:[%s3418_s27 + $0x9a] sm:$0xff] }
  0xa9   : > { %4566 = vst [vmem:[#allocation18_spill] sm:$0xff] %v3793_v20 }
  0xaa   : > { %v3754_v32 = vpop.f32.mrf.mxu0  ;;  %2886 = vmatmul.msk.f32.gmra.mxu1 %vm238_vm1, %v3708_v3  ;;  %v3837_v3 = vld [vmem:[%s3418_s27 + $0xb2] sm:$0xff] }
  0xab   : > { %2920 = vmatmul.msk.f32.gmra.mxu2 %vm238_vm1, %v3749_v26  ;;  %4574 = vst [vmem:[#allocation26_spill] sm:$0xff] %v3837_v3 }
  0xac   : > { %2986 = vmatmul.msk.f32.gmra.mxu3 %vm238_vm1, %v3752_v27 }
  0xad   : > { %3052 = vmatmul.msk.f32.gmra.mxu0 %vm238_vm1, %v3521_v28 }
  0xae   : > { %v3764_v21 = vpop.f32.mrf.mxu2 }
  0xaf   : > { %v3766_v41 = vpop.f32.mrf.mxu3  ;;  %v3768_v42 = vpop.f32.mrf.mxu1 }
  0xb0   : > { %4561 = vst [vmem:[#allocation13_spill] sm:$0xff] %v3766_v41 }
  0xb2   : > { %v3776_v45 = vpop.f32.mrf.mxu0  ;;  %2887 = vmatmul.msk.f32.gmra.mxu1 %vm238_vm1, %v3730_v13  ;;  %v3815_v13 = vld [vmem:[%s3418_s27 + $0xaa] sm:$0xff] }
  0xb3   : > { %2921 = vmatmul.msk.f32.gmra.mxu2 %vm238_vm1, %v3771_v43  ;;  %4570 = vst [vmem:[#allocation22_spill] sm:$0xff] %v3815_v13 }
  0xb4   : > { %2987 = vmatmul.msk.f32.gmra.mxu3 %vm238_vm1, %v3774_v44 }
  0xb5   : > { %3053 = vmatmul.msk.f32.gmra.mxu0 %vm238_vm1, %v3545_v33 }
  0xb6   : > { %v3786_v28 = vpop.f32.mrf.mxu2 }
  0xb7   : > { %4564 = vst [vmem:[#allocation16_spill] sm:$0xff] %v3786_v28  ;;  %v3788_v46 = vpop.f32.mrf.mxu3  ;;  %v3790_v41 = vpop.f32.mrf.mxu1 }
  0xb8   : > { %4565 = vst [vmem:[#allocation17_spill] sm:$0xff] %v3788_v46 }
  0xba   : > { %v3798_v0 = vpop.f32.mrf.mxu0  ;;  %2888 = vmatmul.msk.f32.gmra.mxu1 %vm238_vm1, %v3752_v27  ;;  %v3818_v27 = vld [vmem:[%s3418_s27 + $0xc0] sm:$0xff] }
  0xbb   : > { %2922 = vmatmul.msk.f32.gmra.mxu2 %vm238_vm1, %v3793_v20  ;;  %4571 = vst [vmem:[#allocation23_spill] sm:$0xff] %v3818_v27 }
  0xbc   : > { %2988 = vmatmul.msk.f32.gmra.mxu3 %vm238_vm1, %v3796_v8 }
  0xbd   : > { %3054 = vmatmul.msk.f32.gmra.mxu0 %vm238_vm1, %v3565_v37 }
  0xbe   : > { %v3808_v33 = vpop.f32.mrf.mxu2 }
  0xbf   : > { %4568 = vst [vmem:[#allocation20_spill] sm:$0xff] %v3808_v33  ;;  %v3810_v46 = vpop.f32.mrf.mxu3  ;;  %v3812_v43 = vpop.f32.mrf.mxu1 }
  0xc0   : > { %4569 = vst [vmem:[#allocation21_spill] sm:$0xff] %v3810_v46 }
  0xc2   : > { %v3820_v26 = vpop.f32.mrf.mxu0  ;;  %2889 = vmatmul.msk.f32.gmra.mxu1 %vm238_vm1, %v3774_v44  ;;  %v3840_v44 = vld [vmem:[%s3418_s27 + $0xc8] sm:$0xff] }
  0xc3   : > { %2923 = vmatmul.msk.f32.gmra.mxu2 %vm238_vm1, %v3815_v13 }
  0xc4   : > { %2989 = vmatmul.msk.f32.gmra.mxu3 %vm238_vm1, %v3818_v27 }
  0xc5   : > { %3055 = vmatmul.msk.f32.gmra.mxu0 %vm238_vm1, %v3424_v6 }
  0xc6   : > { %v3830_v37 = vpop.f32.mrf.mxu2 }
  0xc7   : > { %4572 = vst [vmem:[#allocation24_spill] sm:$0xff] %v3830_v37  ;;  %v3832_v46 = vpop.f32.mrf.mxu3  ;;  %v3834_v20 = vpop.f32.mrf.mxu1  ;;  %v3857_v37 = vld [vmem:[%s3418_s27 + $0xc2] sm:$0xff] }
  0xc8   : > { %4573 = vst [vmem:[#allocation25_spill] sm:$0xff] %v3832_v46 }
  0xc9   : > { %4577 = vst [vmem:[#allocation29_spill] sm:$0xff] %v3857_v37 }
  0xca   : > { %v3842_v12 = vpop.f32.mrf.mxu0  ;;  %2890 = vmatmul.msk.f32.gmra.mxu1 %vm238_vm1, %v3796_v8 }
  0xcb   : > { %2924 = vmatmul.msk.f32.gmra.mxu2 %vm238_vm1, %v3837_v3 }
  0xcc   : > { %2990 = vmatmul.msk.f32.gmra.mxu3 %vm238_vm1, %v3840_v44 }
  0xcd   : > { %3056 = vmatmul.msk.f32.gmra.mxu0 %vm238_vm1, %v3441_v10 }
  0xce   : > { %v3852_v6 = vpop.f32.mrf.mxu2 }
  0xcf   : > { %4575 = vst [vmem:[#allocation27_spill] sm:$0xff] %v3852_v6  ;;  %v3854_v46 = vpop.f32.mrf.mxu3  ;;  %v568_v13 = vpop.f32.mrf.mxu1 }
  0xd0   : > { %4576 = vst [vmem:[#allocation28_spill] sm:$0xff] %v3854_v46  ;;  %v569_v10 = vadd.f32 %v568_v13, %v3688_v62 }
  0xd2   : > { %v1371_v8 = vpop.f32.mrf.mxu0  ;;  %2891 = vmatmul.msk.f32.gmra.mxu1 %vm238_vm1, %v3818_v27 }
  0xd3   : > { %2925 = vmatmul.msk.f32.gmra.mxu2 %vm238_vm1, %v3857_v37 }
  0xd4   : > { %2991 = vmatmul.msk.f32.gmra.mxu3 %vm238_vm1, %v3860_v61 }
  0xd5   : > { %3057 = vmatmul.msk.f32.gmra.mxu0 %vm238_vm1, %v3458_v14 }
  0xd6   : > { %v814_v46 = vpop.f32.mrf.mxu2 }
  0xd7   : > { %v910_v3 = vadd.f32 %v814_v46, %v569_v10  ;;  %v1093_v6 = vpop.f32.mrf.mxu3  ;;  %v571_v33 = vpop.f32.mrf.mxu1 }
  0xd8   : > { %v572_v14 = vadd.f32 %v571_v33, %v3710_v4 }
  0xd9   : > { %v1189_v27 = vadd.f32 %v1093_v6, %v910_v3  ;;  %v3892_v6 = vld [vmem:[%s3418_s27 + $0xf0] sm:$0xff] }
  0xda   : > { %v1374_v37 = vpop.f32.mrf.mxu0  ;;  %2892 = vmatmul.msk.f32.gmra.mxu1 %vm238_vm1, %v3840_v44 }
  0xdb   : > { %v3877_v28 = vadd.f32 %v1371_v8, %v1189_v27  ;;  %2926 = vmatmul.msk.f32.gmra.mxu2 %vm238_vm1, %v3872_v2  ;;  %v3889_v27 = vld [vmem:[%s3418_s27 + $0xda] sm:$0xff] }
  0xdc   : > { %2992 = vmatmul.msk.f32.gmra.mxu3 %vm238_vm1, %v3875_v58 }
  0xdd   : > { %4578 = vst [vmem:[#allocation30_spill] sm:$0xff] %v3877_v28  ;;  %3058 = vmatmul.msk.f32.gmra.mxu0 %vm238_vm1, %v3475_v18 }
  0xde   : > { %v817_v62 = vpop.f32.mrf.mxu2 }
  0xdf   : > { %v911_v3 = vadd.f32 %v817_v62, %v572_v14  ;;  %v1096_v13 = vpop.f32.mrf.mxu3  ;;  %v574_v8 = vpop.f32.mrf.mxu1  ;;  %v3906_v62 = vld [vmem:[%s3418_s27 + $0xe2] sm:$0xff] }
  0xe0   : > { %v575_v18 = vadd.f32 %v574_v8, %v3732_v16 }
  0xe1   : > { %v1190_v46 = vadd.f32 %v1096_v13, %v911_v3  ;;  %v3909_v13 = vld [vmem:[%s3418_s27 + $0xf8] sm:$0xff] }
  0xe2   : > { %v1377_v10 = vpop.f32.mrf.mxu0  ;;  %2893 = vmatmul.msk.f32.gmra.mxu1 %vm238_vm1, %v3860_v61 }
  0xe3   : > { %v3894_v28 = vadd.f32 %v1374_v37, %v1190_v46  ;;  %2927 = vmatmul.msk.f32.gmra.mxu2 %vm238_vm1, %v3889_v27 }
  0xe4   : > { %2993 = vmatmul.msk.f32.gmra.mxu3 %vm238_vm1, %v3892_v6 }
  0xe5   : > { %4579 = vst [vmem:[#allocation31_spill] sm:$0xff] %v3894_v28  ;;  %3059 = vmatmul.msk.f32.gmra.mxu0 %vm238_vm1, %v3492_v22 }
  0xe6   : > { %v820_v4 = vpop.f32.mrf.mxu2 }
  0xe7   : > { %v912_v33 = vadd.f32 %v820_v4, %v575_v18  ;;  %v1099_v14 = vpop.f32.mrf.mxu3  ;;  %v577_v37 = vpop.f32.mrf.mxu1  ;;  %v3923_v4 = vld [vmem:[%s3418_s27 + $0xf2] sm:$0xff] }
  0xe8   : > { %v578_v22 = vadd.f32 %v577_v37, %v3754_v32 }
  0xe9   : > { %v1191_v3 = vadd.f32 %v1099_v14, %v912_v33  ;;  %v3926_v14 = vld [vmem:[%s3418_s27 + $0x108] sm:$0xff] }
  0xea   : > { %v1380_v46 = vpop.f32.mrf.mxu0  ;;  %2894 = vmatmul.msk.f32.gmra.mxu1 %vm238_vm1, %v3875_v58 }
  0xeb   : > { %v3911_v28 = vadd.f32 %v1377_v10, %v1191_v3  ;;  %2928 = vmatmul.msk.f32.gmra.mxu2 %vm238_vm1, %v3906_v62 }
  0xec   : > { %2994 = vmatmul.msk.f32.gmra.mxu3 %vm238_vm1, %v3909_v13 }
  0xed   : > { %4580 = vst [vmem:[#allocation32_spill] sm:$0xff] %v3911_v28  ;;  %3060 = vmatmul.msk.f32.gmra.mxu0 %vm238_vm1, %v3524_v29 }
  0xee   : > { %v823_v16 = vpop.f32.mrf.mxu2 }
  0xef   : > { %v913_v8 = vadd.f32 %v823_v16, %v578_v22  ;;  %v1102_v18 = vpop.f32.mrf.mxu3  ;;  %v580_v10 = vpop.f32.mrf.mxu1  ;;  %v3940_v16 = vld [vmem:[%s3418_s27 + $0xfa] sm:$0xff] }
  0xf0   : > { %v581_v29 = vadd.f32 %v580_v10, %v3776_v45 }
  0xf1   : > { %v1192_v33 = vadd.f32 %v1102_v18, %v913_v8  ;;  %v3943_v18 = vld [vmem:[%s3418_s27 + $0x110] sm:$0xff] }
  0xf2   : > { %v1383_v3 = vpop.f32.mrf.mxu0  ;;  %2895 = vmatmul.msk.f32.gmra.mxu1 %vm238_vm1, %v3892_v6 }
  0xf3   : > { %v3928_v28 = vadd.f32 %v1380_v46, %v1192_v33  ;;  %2929 = vmatmul.msk.f32.gmra.mxu2 %vm238_vm1, %v3923_v4 }
  0xf4   : > { %2995 = vmatmul.msk.f32.gmra.mxu3 %vm238_vm1, %v3926_v14 }
  0xf5   : > { %4581 = vst [vmem:[#allocation33_spill] sm:$0xff] %v3928_v28  ;;  %3061 = vmatmul.msk.f32.gmra.mxu0 %vm238_vm1, %v3548_v34 }
  0xf6   : > { %v826_v32 = vpop.f32.mrf.mxu2 }
  0xf7   : > { %v914_v37 = vadd.f32 %v826_v32, %v581_v29  ;;  %v1105_v22 = vpop.f32.mrf.mxu3  ;;  %v583_v46 = vpop.f32.mrf.mxu1  ;;  %v3957_v32 = vld [vmem:[%s3418_s27 + $0x10a] sm:$0xff] }
  0xf8   : > { %v584_v34 = vadd.f32 %v583_v46, %v3798_v0 }
  0xf9   : > { %v1193_v8 = vadd.f32 %v1105_v22, %v914_v37  ;;  %v3960_v22 = vld [vmem:[%s3418_s27 + $0x120] sm:$0xff] }
  0xfa   : > { %v1386_v33 = vpop.f32.mrf.mxu0  ;;  %2896 = vmatmul.msk.f32.gmra.mxu1 %vm238_vm1, %v3909_v13 }
  0xfb   : > { %v3945_v28 = vadd.f32 %v1383_v3, %v1193_v8  ;;  %2930 = vmatmul.msk.f32.gmra.mxu2 %vm238_vm1, %v3940_v16 }
  0xfc   : > { %2996 = vmatmul.msk.f32.gmra.mxu3 %vm238_vm1, %v3943_v18 }
  0xfd   : > { %4582 = vst [vmem:[#allocation34_spill] sm:$0xff] %v3945_v28  ;;  %3062 = vmatmul.msk.f32.gmra.mxu0 %vm238_vm1, %v3568_v38 }
  0xfe   : > { %v829_v45 = vpop.f32.mrf.mxu2 }
  0xff   : > { %v915_v10 = vadd.f32 %v829_v45, %v584_v34  ;;  %v1108_v29 = vpop.f32.mrf.mxu3  ;;  %v586_v3 = vpop.f32.mrf.mxu1  ;;  %v3974_v45 = vld [vmem:[%s3418_s27 + $0x112] sm:$0xff] }
 0x100   : > { %v587_v38 = vadd.f32 %v586_v3, %v3820_v26 }
 0x101   : > { %v1194_v37 = vadd.f32 %v1108_v29, %v915_v10  ;;  %v3977_v29 = vld [vmem:[%s3418_s27 + $0x128] sm:$0xff] }
 0x102   : > { %v1389_v8 = vpop.f32.mrf.mxu0  ;;  %2897 = vmatmul.msk.f32.gmra.mxu1 %vm238_vm1, %v3926_v14 }
 0x103   : > { %v3962_v28 = vadd.f32 %v1386_v33, %v1194_v37  ;;  %2931 = vmatmul.msk.f32.gmra.mxu2 %vm238_vm1, %v3957_v32 }
 0x104   : > { %2997 = vmatmul.msk.f32.gmra.mxu3 %vm238_vm1, %v3960_v22 }
 0x105   : > { %4583 = vst [vmem:[#allocation35_spill] sm:$0xff] %v3962_v28  ;;  %3063 = vmatmul.msk.f32.gmra.mxu0 %vm238_vm1, %v3427_v7 }
 0x106   : > { %v832_v0 = vpop.f32.mrf.mxu2 }
 0x107   : > { %v916_v46 = vadd.f32 %v832_v0, %v587_v38  ;;  %v1111_v34 = vpop.f32.mrf.mxu3  ;;  %v589_v33 = vpop.f32.mrf.mxu1  ;;  %v3991_v0 = vld [vmem:[%s3418_s27 + $0x122] sm:$0xff] }
 0x108   : > { %v590_v7 = vadd.f32 %v589_v33, %v3842_v12 }
 0x109   : > { %v1195_v10 = vadd.f32 %v1111_v34, %v916_v46  ;;  %v2965_v34 = vld [vmem:[%s3418_s27 + $0x138] sm:$0xff] }
 0x10a   : > { %v1392_v37 = vpop.f32.mrf.mxu0  ;;  %2898 = vmatmul.msk.f32.gmra.mxu1 %vm238_vm1, %v3943_v18 }
 0x10b   : > { %v3979_v28 = vadd.f32 %v1389_v8, %v1195_v10  ;;  %2932 = vmatmul.msk.f32.gmra.mxu2 %vm238_vm1, %v3974_v45 }
 0x10c   : > { %2998 = vmatmul.msk.f32.gmra.mxu3 %vm238_vm1, %v3977_v29 }
 0x10d   : > { %4584 = vst [vmem:[#allocation36_spill] sm:$0xff] %v3979_v28  ;;  %3064 = vmatmul.msk.f32.gmra.mxu0 %vm238_vm1, %v3444_v11 }
 0x10e   : > { %v835_v26 = vpop.f32.mrf.mxu2 }
 0x10f   : > { %v917_v3 = vadd.f32 %v835_v26, %v590_v7  ;;  %v1114_v38 = vpop.f32.mrf.mxu3  ;;  %v592_v8 = vpop.f32.mrf.mxu1 }
 0x110   : > { %v593_v11 = vadd.f32 %v592_v8, %v3680_v59 }
 0x111   : > { %v1196_v46 = vadd.f32 %v1114_v38, %v917_v3  ;;  %v2966_v38 = vld [vmem:[%s3418_s27 + $0x140] sm:$0xff] }
 0x112   : > { %v1395_v10 = vpop.f32.mrf.mxu0  ;;  %2899 = vmatmul.msk.f32.gmra.mxu1 %vm238_vm1, %v3960_v22 }
 0x113   : > { %v3994_v28 = vadd.f32 %v1392_v37, %v1196_v46  ;;  %2933 = vmatmul.msk.f32.gmra.mxu2 %vm238_vm1, %v3991_v0  ;;  %v4005_v37 = vld [vmem:[%s3418_s27 + $0x12a] sm:$0xff] }
 0x114   : > { %2999 = vmatmul.msk.f32.gmra.mxu3 %vm238_vm1, %v2965_v34 }
 0x115   : > { %4585 = vst [vmem:[#allocation37_spill] sm:$0xff] %v3994_v28  ;;  %3065 = vmatmul.msk.f32.gmra.mxu0 %vm238_vm1, %v3461_v15 }
 0x116   : > { %v838_v12 = vpop.f32.mrf.mxu2 }
 0x117   : > { %v918_v33 = vadd.f32 %v838_v12, %v593_v11  ;;  %v1117_v7 = vpop.f32.mrf.mxu3  ;;  %v595_v26 = vpop.f32.mrf.mxu1 }
 0x118   : > { %v596_v15 = vadd.f32 %v595_v26, %v3702_v1 }
 0x119   : > { %v1197_v3 = vadd.f32 %v1117_v7, %v918_v33  ;;  %v2967_v7 = vld [vmem:[%s3418_s27 + $0x150] sm:$0xff] }
 0x11a   : > { %v1398_v46 = vpop.f32.mrf.mxu0  ;;  %2900 = vmatmul.msk.f32.gmra.mxu1 %vm238_vm1, %v3977_v29 }
 0x11b   : > { %v4008_v28 = vadd.f32 %v1395_v10, %v1197_v3  ;;  %2934 = vmatmul.msk.f32.gmra.mxu2 %vm238_vm1, %v4005_v37  ;;  %v4019_v10 = vld [vmem:[%s3418_s27 + $0x13a] sm:$0xff] }
 0x11c   : > { %3000 = vmatmul.msk.f32.gmra.mxu3 %vm238_vm1, %v2966_v38 }
 0x11d   : > { %4586 = vst [vmem:[#allocation38_spill] sm:$0xff] %v4008_v28  ;;  %3066 = vmatmul.msk.f32.gmra.mxu0 %vm238_vm1, %v3478_v19 }
 0x11e   : > { %v841_v59 = vpop.f32.mrf.mxu2 }
 0x11f   : > { %v919_v8 = vadd.f32 %v841_v59, %v596_v15  ;;  %v1120_v11 = vpop.f32.mrf.mxu3  ;;  %v598_v12 = vpop.f32.mrf.mxu1 }
 0x120   : > { %v599_v19 = vadd.f32 %v598_v12, %v3724_v9 }
 0x121   : > { %v1198_v33 = vadd.f32 %v1120_v11, %v919_v8  ;;  %v691_v8 = vld [vmem:[%s3418_s27 + $0x142] sm:$0xff]  ;;  %v2968_v11 = vld [vmem:[%s3418_s27 + $0x158] sm:$0xff] }
 0x122   : > { %v1401_v3 = vpop.f32.mrf.mxu0  ;;  %2901 = vmatmul.msk.f32.gmra.mxu1 %vm238_vm1, %v2965_v34 }
 0x123   : > { %v4022_v28 = vadd.f32 %v1398_v46, %v1198_v33  ;;  %2935 = vmatmul.msk.f32.gmra.mxu2 %vm238_vm1, %v4019_v10 }
 0x124   : > { %3001 = vmatmul.msk.f32.gmra.mxu3 %vm238_vm1, %v2967_v7 }
 0x125   : > { %3067 = vmatmul.msk.f32.gmra.mxu0 %vm238_vm1, %v3495_v23 }
 0x126   : > { %v844_v1 = vpop.f32.mrf.mxu2 }
 0x127   : > { %v920_v26 = vadd.f32 %v844_v1, %v599_v19  ;;  %v1123_v15 = vpop.f32.mrf.mxu3  ;;  %v601_v59 = vpop.f32.mrf.mxu1 }
 0x128   : > { %v602_v23 = vadd.f32 %v601_v59, %v3746_v25 }
 0x129   : > { %v1199_v46 = vadd.f32 %v1123_v15, %v920_v26  ;;  %v692_v26 = vld [vmem:[%s3418_s27 + $0x152] sm:$0xff]  ;;  %v2969_v15 = vld [vmem:[%s3418_s27 + $0x168] sm:$0xff] }
 0x12a   : > { %v1404_v34 = vpop.f32.mrf.mxu0  ;;  %2902 = vmatmul.msk.f32.gmra.mxu1 %vm238_vm1, %v2966_v38 }
 0x12b   : > { %v4033_v33 = vadd.f32 %v1401_v3, %v1199_v46  ;;  %2936 = vmatmul.msk.f32.gmra.mxu2 %vm238_vm1, %v691_v8 }
 0x12c   : > { %3002 = vmatmul.msk.f32.gmra.mxu3 %vm238_vm1, %v2968_v11 }
 0x12d   : > { %3068 = vmatmul.msk.f32.gmra.mxu0 %vm238_vm1, %v3527_v30 }
 0x12e   : > { %v847_v9 = vpop.f32.mrf.mxu2 }
 0x12f   : > { %v921_v12 = vadd.f32 %v847_v9, %v602_v23  ;;  %v1126_v19 = vpop.f32.mrf.mxu3  ;;  %v604_v1 = vpop.f32.mrf.mxu1  ;;  %v693_v9 = vld [vmem:[%s3418_s27 + $0x15a] sm:$0xff] }
 0x130   : > { %v605_v30 = vadd.f32 %v604_v1, %v3768_v42 }
 0x131   : > { %v1200_v3 = vadd.f32 %v1126_v19, %v921_v12  ;;  %v2970_v12 = vld [vmem:[%s3418_s27 + $0x170] sm:$0xff] }
 0x132   : > { %v1407_v46 = vpop.f32.mrf.mxu0  ;;  %2903 = vmatmul.msk.f32.gmra.mxu1 %vm238_vm1, %v2967_v7 }
 0x133   : > { %v4043_v38 = vadd.f32 %v1404_v34, %v1200_v3  ;;  %2937 = vmatmul.msk.f32.gmra.mxu2 %vm238_vm1, %v692_v26 }
 0x134   : > { %3003 = vmatmul.msk.f32.gmra.mxu3 %vm238_vm1, %v2969_v15 }
 0x135   : > { %3069 = vmatmul.msk.f32.gmra.mxu0 %vm238_vm1, %v3551_v35 }
 0x136   : > { %v850_v25 = vpop.f32.mrf.mxu2 }
 0x137   : > { %v922_v59 = vadd.f32 %v850_v25, %v605_v30  ;;  %v1129_v8 = vpop.f32.mrf.mxu3  ;;  %v607_v23 = vpop.f32.mrf.mxu1  ;;  %v694_v30 = vld [vmem:[%s3418_s27 + $0x16a] sm:$0xff] }
 0x138   : > { %v608_v35 = vadd.f32 %v607_v23, %v3790_v41 }
 0x139   : > { %v1201_v34 = vadd.f32 %v1129_v8, %v922_v59 }
 0x13a   : > { %v1410_v7 = vpop.f32.mrf.mxu0  ;;  %2904 = vmatmul.msk.f32.gmra.mxu1 %vm238_vm1, %v2968_v11  ;;  %v3037_v11 = vld [vmem:[%s3418_s27 + $0x181] sm:$0xff] }
 0x13b   : > { %v4053_v19 = vadd.f32 %v1407_v46, %v1201_v34  ;;  %2938 = vmatmul.msk.f32.gmra.mxu2 %vm238_vm1, %v693_v9  ;;  %v2971_v46 = vld [vmem:[%s3418_s27 + $0x180] sm:$0xff] }
 0x13c   : > { %3004 = vmatmul.msk.f32.gmra.mxu3 %vm238_vm1, %v2970_v12 }
 0x13d   : > { %3070 = vmatmul.msk.f32.gmra.mxu0 %vm238_vm1, %v3571_v39 }
 0x13e   : > { %v853_v42 = vpop.f32.mrf.mxu2 }
 0x13f   : > { %v923_v1 = vadd.f32 %v853_v42, %v608_v35  ;;  %v1132_v26 = vpop.f32.mrf.mxu3  ;;  %v610_v3 = vpop.f32.mrf.mxu1  ;;  %v695_v35 = vld [vmem:[%s3418_s27 + $0x172] sm:$0xff] }
 0x140   : > { %v611_v39 = vadd.f32 %v610_v3, %v3812_v43 }
 0x141   : > { %v1202_v25 = vadd.f32 %v1132_v26, %v923_v1  ;;  %v2972_v1 = vld [vmem:[%s3418_s27 + $0x188] sm:$0xff] }
 0x142   : > { %v1413_v59 = vpop.f32.mrf.mxu0  ;;  %2905 = vmatmul.msk.f32.gmra.mxu1 %vm238_vm1, %v2969_v15 }
 0x143   : > { %v4064_v8 = vadd.f32 %v1410_v7, %v1202_v25  ;;  %2939 = vmatmul.msk.f32.gmra.mxu2 %vm238_vm1, %v694_v30  ;;  %v3038_v7 = vld [vmem:[%s3418_s27 + $0x189] sm:$0xff] }
 0x144   : > { %3005 = vmatmul.msk.f32.gmra.mxu3 %vm238_vm1, %v2971_v46 }
 0x145   : > { %3071 = vmatmul.msk.f32.gmra.mxu0 %vm238_vm1, %v3037_v11 }
 0x146   : > { %v856_v41 = vpop.f32.mrf.mxu2 }
 0x147   : > { %v924_v23 = vadd.f32 %v856_v41, %v611_v39  ;;  %v1135_v9 = vpop.f32.mrf.mxu3  ;;  %v613_v34 = vpop.f32.mrf.mxu1 }
 0x148   : > { %v614_v43 = vadd.f32 %v613_v34, %v3834_v20 }
 0x149   : > { %v1203_v42 = vadd.f32 %v1135_v9, %v924_v23 }
 0x14a   : > { %v1416_v26 = vpop.f32.mrf.mxu0  ;;  %2906 = vmatmul.msk.f32.gmra.mxu1 %vm238_vm1, %v2970_v12 }
 0x14b   : > { %v4074_v25 = vadd.f32 %v1413_v59, %v1203_v42  ;;  %2940 = vmatmul.msk.f32.gmra.mxu2 %vm238_vm1, %v695_v35 }
 0x14c   : > { %3006 = vmatmul.msk.f32.gmra.mxu3 %vm238_vm1, %v2972_v1 }
 0x14d   : > { %3072 = vmatmul.msk.f32.gmra.mxu0 %vm238_vm1, %v3038_v7 }
 0x14e   : > { %v859_v15 = vpop.f32.mrf.mxu2 }
 0x14f   : > { %v925_v3 = vadd.f32 %v859_v15, %v614_v43  ;;  %v1138_v30 = vpop.f32.mrf.mxu3  ;;  %v616_v46 = vpop.f32.mrf.mxu1 }
 0x150   : > { %v617_v20 = vadd.f32 %v616_v46, %v3698_v63 }
 0x151   : > { %v1204_v11 = vadd.f32 %v1138_v30, %v925_v3 }
 0x152   : > { %v1419_v39 = vpop.f32.mrf.mxu0  ;;  %3107 = vmatmul.msk.f32.vlgmr.msra.gmra.mxu1 %vm238_vm1, %v3599_v47 }
 0x153   : > { %v4081_v41 = vadd.f32 %v1416_v26, %v1204_v11  ;;  %3173 = vmatmul.msk.f32.vlgmr.msra.gmra.mxu2 %vm238_vm1, %v3602_v48 }
 0x154   : > { %3239 = vmatmul.msk.f32.vlgmr.msra.gmra.mxu3 %vm238_vm1, %v3498_v24 }
 0x155   : > { %3305 = vmatmul.msk.f32.vlgmr.msra.gmra.mxu0 %vm238_vm1, %v3625_v51 }
 0x156   : > { %v862_v12 = vpop.f32.mrf.mxu2 }
 0x157   : > { %v926_v59 = vadd.f32 %v862_v12, %v617_v20  ;;  %v1141_v23 = vpop.f32.mrf.mxu3  ;;  %v619_v9 = vpop.f32.mrf.mxu1  ;;  %v3209_v20 = vld [vmem:[%s3418_s27 + $0x61] sm:$0xff] }
 0x158   : > { %v620_v24 = vadd.f32 %v619_v9, %v3720_v5 }
 0x159   : > { %v1205_v34 = vadd.f32 %v1141_v23, %v926_v59 }
 0x15a   : > { %v1422_v35 = vpop.f32.mrf.mxu0  ;;  %3108 = vmatmul.msk.f32.gmra.mxu1 %vm238_vm1, %v3612_v49 }
 0x15b   : > { %v4092_v42 = vadd.f32 %v1419_v39, %v1205_v34  ;;  %3174 = vmatmul.msk.f32.gmra.mxu2 %vm238_vm1, %v3615_v50 }
 0x15c   : > { %3240 = vmatmul.msk.f32.gmra.mxu3 %vm238_vm1, %v3530_v31 }
 0x15d   : > { %3306 = vmatmul.msk.f32.gmra.mxu0 %vm238_vm1, %v3639_v53 }
 0x15e   : > { %v865_v47 = vpop.f32.mrf.mxu2 }
 0x15f   : > { %v927_v48 = vadd.f32 %v865_v47, %v620_v24  ;;  %v1144_v63 = vpop.f32.mrf.mxu3  ;;  %v622_v1 = vpop.f32.mrf.mxu1 }
 0x160   : > { %v623_v31 = vadd.f32 %v622_v1, %v3742_v17 }
 0x161   : > { %v1206_v26 = vadd.f32 %v1144_v63, %v927_v48  ;;  %v4590_v48 = vld [vmem:[#allocation20_spill] sm:$0xff] }
 0x162   : > { %v1425_v7 = vpop.f32.mrf.mxu0  ;;  %3109 = vmatmul.msk.f32.gmra.mxu1 %vm238_vm1, %v3625_v51 }
 0x163   : > { %v4103_v43 = vadd.f32 %v1422_v35, %v1206_v26  ;;  %3175 = vmatmul.msk.f32.gmra.mxu2 %vm238_vm1, %v3628_v52  ;;  %v3210_v35 = vld [vmem:[%s3418_s27 + $0x69] sm:$0xff] }
 0x164   : > { %3241 = vmatmul.msk.f32.gmra.mxu3 %vm238_vm1, %v3554_v36 }
 0x165   : > { %3307 = vmatmul.msk.f32.gmra.mxu0 %vm238_vm1, %v3653_v55 }
 0x166   : > { %v868_v49 = vpop.f32.mrf.mxu2 }
 0x167   : > { %v928_v50 = vadd.f32 %v868_v49, %v623_v31  ;;  %v1147_v5 = vpop.f32.mrf.mxu3  ;;  %v625_v15 = vpop.f32.mrf.mxu1 }
 0x168   : > { %v626_v36 = vadd.f32 %v625_v15, %v3764_v21 }
 0x169   : > { %v1207_v3 = vadd.f32 %v1147_v5, %v928_v50  ;;  %v3211_v50 = vld [vmem:[%s3418_s27 + $0x79] sm:$0xff] }
 0x16a   : > { %v1428_v30 = vpop.f32.mrf.mxu0  ;;  %3110 = vmatmul.msk.f32.gmra.mxu1 %vm238_vm1, %v3639_v53 }
 0x16b   : > { %v4114_v46 = vadd.f32 %v1425_v7, %v1207_v3  ;;  %3176 = vmatmul.msk.f32.gmra.mxu2 %vm238_vm1, %v3642_v54  ;;  %v4592_v3 = vld [vmem:[#allocation8_spill] sm:$0xff] }
 0x16c   : > { %3242 = vmatmul.msk.f32.gmra.mxu3 %vm238_vm1, %v3574_v40  ;;  %v4587_v40 = vld [vmem:[#allocation16_spill] sm:$0xff] }
 0x16d   : > { %3308 = vmatmul.msk.f32.gmra.mxu0 %vm238_vm1, %v3667_v57 }
 0x16e   : > { %v871_v51 = vpop.f32.mrf.mxu2 }
 0x16f   : > { %v929_v52 = vadd.f32 %v871_v51, %v626_v36  ;;  %v1150_v17 = vpop.f32.mrf.mxu3  ;;  %v628_v11 = vpop.f32.mrf.mxu1 }
 0x170   : > { %v629_v54 = vadd.f32 %v628_v11, %v4587_v40 }
 0x171   : > { %v1208_v39 = vadd.f32 %v1150_v17, %v929_v52 }
 0x172   : > { %v1431_v12 = vpop.f32.mrf.mxu0  ;;  %3111 = vmatmul.msk.f32.gmra.mxu1 %vm238_vm1, %v3653_v55  ;;  %v4588_v55 = vld [vmem:[#allocation2_spill] sm:$0xff] }
 0x173   : > { %v4126_v53 = vadd.f32 %v1428_v30, %v1208_v39  ;;  %3177 = vmatmul.msk.f32.gmra.mxu2 %vm238_vm1, %v3656_v56  ;;  %v4589_v56 = vld [vmem:[#allocation5_spill] sm:$0xff]  ;;  %v4593_v30 = vld [vmem:[#allocation24_spill] sm:$0xff] }
 0x174   : > { %3243 = vmatmul.msk.f32.gmra.mxu3 %vm238_vm1, %v3209_v20  ;;  %v3212_v20 = vld [vmem:[%s3418_s27 + $0x81] sm:$0xff] }
 0x175   : > { %3309 = vmatmul.msk.f32.gmra.mxu0 %vm238_vm1, %v3683_v60 }
 0x176   : > { %v874_v21 = vpop.f32.mrf.mxu2 }
 0x177   : > { %v930_v59 = vadd.f32 %v874_v21, %v629_v54  ;;  %v1153_v23 = vpop.f32.mrf.mxu3  ;;  %v631_v9 = vpop.f32.mrf.mxu1  ;;  %v4595_v54 = vld [vmem:[#allocation11_spill] sm:$0xff] }
 0x178   : > { %v632_v63 = vadd.f32 %v631_v9, %v4590_v48  ;;  %v4596_v21 = vld [vmem:[#allocation27_spill] sm:$0xff] }
 0x179   : > { %v1209_v34 = vadd.f32 %v1153_v23, %v930_v59 }
 0x17a   : > { %v1434_v24 = vpop.f32.mrf.mxu0  ;;  %3112 = vmatmul.msk.f32.gmra.mxu1 %vm238_vm1, %v3667_v57  ;;  %v4591_v57 = vld [vmem:[#allocation3_spill] sm:$0xff] }
 0x17b   : > { %v4137_v47 = vadd.f32 %v1431_v12, %v1209_v34  ;;  %3178 = vmatmul.msk.f32.gmra.mxu2 %vm238_vm1, %v4588_v55  ;;  %v3213_v55 = vld [vmem:[%s3418_s27 + $0x91] sm:$0xff] }
 0x17c   : > { %3244 = vmatmul.msk.f32.gmra.mxu3 %vm238_vm1, %v3210_v35 }
 0x17d   : > { %3310 = vmatmul.msk.f32.gmra.mxu0 %vm238_vm1, %v4589_v56 }
 0x17e   : > { %v877_v1 = vpop.f32.mrf.mxu2 }
 0x17f   : > { %v931_v26 = vadd.f32 %v877_v1, %v632_v63  ;;  %v1156_v7 = vpop.f32.mrf.mxu3  ;;  %v634_v31 = vpop.f32.mrf.mxu1  ;;  %v4598_v1 = vld [vmem:[#allocation14_spill] sm:$0xff] }
 0x180   : > { %v635_v36 = vadd.f32 %v634_v31, %v4593_v30  ;;  %v3214_v30 = vld [vmem:[%s3418_s27 + $0x99] sm:$0xff] }
 0x181   : > { %v1210_v49 = vadd.f32 %v1156_v7, %v931_v26  ;;  %v4599_v26 = vld [vmem:[#allocation4_spill] sm:$0xff] }
 0x182   : > { %v1437_v5 = vpop.f32.mrf.mxu0  ;;  %3113 = vmatmul.msk.f32.gmra.mxu1 %vm238_vm1, %v3683_v60  ;;  %v4594_v60 = vld [vmem:[#allocation6_spill] sm:$0xff] }
 0x183   : > { %v4148_v15 = vadd.f32 %v1434_v24, %v1210_v49  ;;  %3179 = vmatmul.msk.f32.gmra.mxu2 %vm238_vm1, %v4591_v57 }
 0x184   : > { %3245 = vmatmul.msk.f32.gmra.mxu3 %vm238_vm1, %v3211_v50 }
 0x185   : > { %3311 = vmatmul.msk.f32.gmra.mxu0 %vm238_vm1, %v4592_v3 }
 0x186   : > { %v880_v51 = vpop.f32.mrf.mxu2 }
 0x187   : > { %v932_v52 = vadd.f32 %v880_v51, %v635_v36  ;;  %v1159_v17 = vpop.f32.mrf.mxu3  ;;  %v637_v11 = vpop.f32.mrf.mxu1 }
 0x188   : > { %v638_v59 = vadd.f32 %v637_v11, %v4596_v21 }
 0x189   : > { %v1211_v39 = vadd.f32 %v1159_v17, %v932_v52  ;;  %v4601_v52 = vld [vmem:[#allocation18_spill] sm:$0xff]  ;;  %v4602_v17 = vld [vmem:[#allocation7_spill] sm:$0xff] }
 0x18a   : > { %v1440_v12 = vpop.f32.mrf.mxu0  ;;  %3114 = vmatmul.msk.f32.gmra.mxu1 %vm238_vm1, %v4589_v56  ;;  %v4597_v56 = vld [vmem:[#allocation9_spill] sm:$0xff] }
 0x18b   : > { %v4159_v40 = vadd.f32 %v1437_v5, %v1211_v39  ;;  %3180 = vmatmul.msk.f32.gmra.mxu2 %vm238_vm1, %v4594_v60 }
 0x18c   : > { %3246 = vmatmul.msk.f32.gmra.mxu3 %vm238_vm1, %v3212_v20 }
 0x18d   : > { %3312 = vmatmul.msk.f32.gmra.mxu0 %vm238_vm1, %v4595_v54 }
 0x18e   : > { %v883_v23 = vpop.f32.mrf.mxu2 }
 0x18f   : > { %v933_v9 = vadd.f32 %v883_v23, %v638_v59  ;;  %v1162_v34 = vpop.f32.mrf.mxu3  ;;  %v640_v35 = vpop.f32.mrf.mxu1  ;;  %v3215_v59 = vld [vmem:[%s3418_s27 + $0xa9] sm:$0xff] }
 0x190   : > { %v641_v7 = vadd.f32 %v640_v35, %v4599_v26  ;;  %v4605_v35 = vld [vmem:[#allocation10_spill] sm:$0xff] }
 0x191   : > { %v1212_v24 = vadd.f32 %v1162_v34, %v933_v9  ;;  %v4604_v34 = vld [vmem:[#allocation22_spill] sm:$0xff] }
 0x192   : > { %v1443_v48 = vpop.f32.mrf.mxu0  ;;  %3115 = vmatmul.msk.f32.gmra.mxu1 %vm238_vm1, %v4592_v3  ;;  %v4600_v3 = vld [vmem:[#allocation12_spill] sm:$0xff] }
 0x193   : > { %v4170_v63 = vadd.f32 %v1440_v12, %v1212_v24  ;;  %3181 = vmatmul.msk.f32.gmra.mxu2 %vm238_vm1, %v4597_v56 }
 0x194   : > { %3247 = vmatmul.msk.f32.gmra.mxu3 %vm238_vm1, %v3213_v55 }
 0x195   : > { %3313 = vmatmul.msk.f32.gmra.mxu0 %vm238_vm1, %v4598_v1 }
 0x196   : > { %v886_v31 = vpop.f32.mrf.mxu2 }
 0x197   : > { %v934_v49 = vadd.f32 %v886_v31, %v641_v7  ;;  %v1165_v50 = vpop.f32.mrf.mxu3  ;;  %v643_v5 = vpop.f32.mrf.mxu1  ;;  %v3216_v31 = vld [vmem:[%s3418_s27 + $0xb1] sm:$0xff] }
 0x198   : > { %v644_v11 = vadd.f32 %v643_v5, %v4602_v17  ;;  %v4607_v5 = vld [vmem:[#allocation26_spill] sm:$0xff] }
 0x199   : > { %v1213_v57 = vadd.f32 %v1165_v50, %v934_v49 }
 0x19a   : > { %v1446_v36 = vpop.f32.mrf.mxu0  ;;  %3116 = vmatmul.msk.f32.gmra.mxu1 %vm238_vm1, %v4595_v54  ;;  %v4603_v54 = vld [vmem:[#allocation15_spill] sm:$0xff] }
 0x19b   : > { %v4181_v51 = vadd.f32 %v1443_v48, %v1213_v57  ;;  %3182 = vmatmul.msk.f32.gmra.mxu2 %vm238_vm1, %v4600_v3  ;;  %v4608_v57 = vld [vmem:[#allocation13_spill] sm:$0xff] }
 0x19c   : > { %3248 = vmatmul.msk.f32.gmra.mxu3 %vm238_vm1, %v3214_v30 }
 0x19d   : > { %3314 = vmatmul.msk.f32.gmra.mxu0 %vm238_vm1, %v4601_v52 }
 0x19e   : > { %v889_v39 = vpop.f32.mrf.mxu2 }
 0x19f   : > { %v935_v20 = vadd.f32 %v889_v39, %v644_v11  ;;  %v1168_v12 = vpop.f32.mrf.mxu3  ;;  %v646_v60 = vpop.f32.mrf.mxu1 }
 0x1a0   : > { %v647_v24 = vadd.f32 %v646_v60, %v4605_v35 }
 0x1a1   : > { %v1214_v21 = vadd.f32 %v1168_v12, %v935_v20  ;;  %v3217_v20 = vld [vmem:[%s3418_s27 + $0xc1] sm:$0xff] }
 0x1a2   : > { %v1449_v23 = vpop.f32.mrf.mxu0  ;;  %3117 = vmatmul.msk.f32.gmra.mxu1 %vm238_vm1, %v4598_v1  ;;  %v4606_v1 = vld [vmem:[#allocation19_spill] sm:$0xff] }
 0x1a3   : > { %v4192_v9 = vadd.f32 %v1446_v36, %v1214_v21  ;;  %3183 = vmatmul.msk.f32.gmra.mxu2 %vm238_vm1, %v4603_v54  ;;  %v4610_v21 = vld [vmem:[#allocation29_spill] sm:$0xff] }
 0x1a4   : > { %3249 = vmatmul.msk.f32.gmra.mxu3 %vm238_vm1, %v3215_v59  ;;  %v4611_v59 = vld [vmem:[#allocation17_spill] sm:$0xff] }
 0x1a5   : > { %3315 = vmatmul.msk.f32.gmra.mxu0 %vm238_vm1, %v4604_v34 }
 0x1a6   : > { %v892_v55 = vpop.f32.mrf.mxu2 }
 0x1a7   : > { %v936_v48 = vadd.f32 %v892_v55, %v647_v24  ;;  %v1171_v56 = vpop.f32.mrf.mxu3  ;;  %v649_v26 = vpop.f32.mrf.mxu1 }
 0x1a8   : > { %v650_v30 = vadd.f32 %v649_v26, %v4608_v57 }
 0x1a9   : > { %v1215_v7 = vadd.f32 %v1171_v56, %v936_v48  ;;  %v3218_v56 = vld [vmem:[%s3418_s27 + $0xc9] sm:$0xff] }
 0x1aa   : > { %v1452_v49 = vpop.f32.mrf.mxu0  ;;  %3118 = vmatmul.msk.f32.gmra.mxu1 %vm238_vm1, %v4601_v52  ;;  %v4609_v52 = vld [vmem:[#allocation23_spill] sm:$0xff] }
 0x1ab   : > { %v4203_v50 = vadd.f32 %v1449_v23, %v1215_v7  ;;  %3184 = vmatmul.msk.f32.gmra.mxu2 %vm238_vm1, %v4606_v1 }
 0x1ac   : > { %3250 = vmatmul.msk.f32.gmra.mxu3 %vm238_vm1, %v3216_v31 }
 0x1ad   : > { %3316 = vmatmul.msk.f32.gmra.mxu0 %vm238_vm1, %v4607_v5 }
 0x1ae   : > { %v895_v36 = vpop.f32.mrf.mxu2 }
 0x1af   : > { %v937_v3 = vadd.f32 %v895_v36, %v650_v30  ;;  %v1174_v17 = vpop.f32.mrf.mxu3  ;;  %v652_v11 = vpop.f32.mrf.mxu1 }
 0x1b0   : > { %v653_v23 = vadd.f32 %v652_v11, %v4611_v59 }
 0x1b1   : > { %v1216_v39 = vadd.f32 %v1174_v17, %v937_v3  ;;  %v3219_v3 = vld [vmem:[%s3418_s27 + $0xd9] sm:$0xff] }
 0x1b2   : > { %v1455_v12 = vpop.f32.mrf.mxu0  ;;  %3119 = vmatmul.msk.f32.gmra.mxu1 %vm238_vm1, %v4604_v34  ;;  %v4612_v34 = vld [vmem:[#allocation21_spill] sm:$0xff] }
 0x1b3   : > { %v4214_v60 = vadd.f32 %v1452_v49, %v1216_v39  ;;  %3185 = vmatmul.msk.f32.gmra.mxu2 %vm238_vm1, %v4609_v52 }
 0x1b4   : > { %3251 = vmatmul.msk.f32.gmra.mxu3 %vm238_vm1, %v3217_v20 }
 0x1b5   : > { %3317 = vmatmul.msk.f32.gmra.mxu0 %vm238_vm1, %v4610_v21 }
 0x1b6   : > { %v898_v54 = vpop.f32.mrf.mxu2 }
 0x1b7   : > { %v938_v35 = vadd.f32 %v898_v54, %v653_v23  ;;  %v1177_v24 = vpop.f32.mrf.mxu3  ;;  %v655_v55 = vpop.f32.mrf.mxu1  ;;  %v3220_v23 = vld [vmem:[%s3418_s27 + $0xe1] sm:$0xff] }
 0x1b8   : > { %v656_v31 = vadd.f32 %v655_v55, %v4612_v34  ;;  %v3221_v34 = vld [vmem:[%s3418_s27 + $0xf1] sm:$0xff] }
 0x1b9   : > { %v1217_v48 = vadd.f32 %v1177_v24, %v938_v35 }
 0x1ba   : > { %v1458_v26 = vpop.f32.mrf.mxu0  ;;  %3120 = vmatmul.msk.f32.gmra.mxu1 %vm238_vm1, %v4607_v5 }
 0x1bb   : > { %v4225_v7 = vadd.f32 %v1455_v12, %v1217_v48  ;;  %3186 = vmatmul.msk.f32.gmra.mxu2 %vm238_vm1, %v3840_v44  ;;  %v4613_v44 = vld [vmem:[#allocation25_spill] sm:$0xff] }
 0x1bc   : > { %3252 = vmatmul.msk.f32.gmra.mxu3 %vm238_vm1, %v3218_v56 }
 0x1bd   : > { %3318 = vmatmul.msk.f32.gmra.mxu0 %vm238_vm1, %v3872_v2 }
 0x1be   : > { %v901_v49 = vpop.f32.mrf.mxu2 }
 0x1bf   : > { %v939_v1 = vadd.f32 %v901_v49, %v656_v31  ;;  %v1180_v57 = vpop.f32.mrf.mxu3  ;;  %v658_v30 = vpop.f32.mrf.mxu1 }
 0x1c0   : > { %v659_v5 = vadd.f32 %v658_v30, %v4613_v44 }
 0x1c1   : > { %v1218_v36 = vadd.f32 %v1180_v57, %v939_v1 }
 0x1c2   : > { %v1461_v17 = vpop.f32.mrf.mxu0  ;;  %3121 = vmatmul.msk.f32.gmra.mxu1 %vm238_vm1, %v4610_v21 }
 0x1c3   : > { %v4236_v11 = vadd.f32 %v1458_v26, %v1218_v36  ;;  %3187 = vmatmul.msk.f32.gmra.mxu2 %vm238_vm1, %v3860_v61  ;;  %v4614_v61 = vld [vmem:[#allocation28_spill] sm:$0xff] }
 0x1c4   : > { %3253 = vmatmul.msk.f32.gmra.mxu3 %vm238_vm1, %v3219_v3 }
 0x1c5   : > { %3319 = vmatmul.msk.f32.gmra.mxu0 %vm238_vm1, %v3889_v27 }
 0x1c6   : > { %v904_v39 = vpop.f32.mrf.mxu2 }
 0x1c7   : > { %v940_v20 = vadd.f32 %v904_v39, %v659_v5  ;;  %v1183_v12 = vpop.f32.mrf.mxu3  ;;  %v661_v52 = vpop.f32.mrf.mxu1  ;;  %v4616_v5 = vld [vmem:[#allocation31_spill] sm:$0xff] }
 0x1c8   : > { %v662_v21 = vadd.f32 %v661_v52, %v4614_v61  ;;  %v3223_v61 = vld [vmem:[%s3418_s27 + $0x109] sm:$0xff] }
 0x1c9   : > { %v1219_v59 = vadd.f32 %v1183_v12, %v940_v20 }
 0x1ca   : > { %v1464_v54 = vpop.f32.mrf.mxu0  ;;  %3122 = vmatmul.msk.f32.gmra.mxu1 %vm238_vm1, %v3872_v2 }
 0x1cb   : > { %v4247_v35 = vadd.f32 %v1461_v17, %v1219_v59  ;;  %3188 = vmatmul.msk.f32.gmra.mxu2 %vm238_vm1, %v3875_v58  ;;  %v4615_v58 = vld [vmem:[#allocation30_spill] sm:$0xff] }
 0x1cc   : > { %3254 = vmatmul.msk.f32.gmra.mxu3 %vm238_vm1, %v3220_v23  ;;  %v3222_v17 = vld [vmem:[%s3418_s27 + $0xf9] sm:$0xff] }
 0x1cd   : > { %3320 = vmatmul.msk.f32.gmra.mxu0 %vm238_vm1, %v3906_v62 }
 0x1ce   : > { %v907_v24 = vpop.f32.mrf.mxu2 }
 0x1cf   : > { %v941_v55 = vadd.f32 %v907_v24, %v662_v21  ;;  %v1186_v48 = vpop.f32.mrf.mxu3  ;;  %v1649_v56 = vpop.f32.mrf.mxu1 }
 0x1d0   : > { %v1745_v2 = vadd.f32 %v1649_v56, %v4615_v58 }
 0x1d1   : > { %v1220_v26 = vadd.f32 %v1186_v48, %v941_v55  ;;  %v4617_v55 = vld [vmem:[#allocation32_spill] sm:$0xff] }
 0x1d2   : > { %v2484_v31 = vpop.f32.mrf.mxu0  ;;  %3123 = vmatmul.msk.f32.gmra.mxu1 %vm238_vm1, %v3889_v27  ;;  %v4271_v27 = vld [vmem:[%s4524_s2] ss:$0 sm:$0xff] }
 0x1d3   : > { %v4258_v49 = vadd.f32 %v1464_v54, %v1220_v26  ;;  %3189 = vmatmul.msk.f32.gmra.mxu2 %vm238_vm1, %v3892_v6 }
 0x1d4   : > { %3255 = vmatmul.msk.f32.gmra.mxu3 %vm238_vm1, %v3221_v34 }
 0x1d5   : > { %3321 = vmatmul.msk.f32.gmra.mxu0 %vm238_vm1, %v3923_v4 }
 0x1d6   : > { %v1928_v1 = vpop.f32.mrf.mxu2 }
 0x1d7   : > { %v2024_v57 = vadd.f32 %v1928_v1, %v1745_v2  ;;  %v2206_v30 = vpop.f32.mrf.mxu3  ;;  %v1652_v36 = vpop.f32.mrf.mxu1 }
 0x1d8   : > { %v1746_v39 = vadd.f32 %v1652_v36, %v4616_v5  ;;  %v4618_v36 = vld [vmem:[#allocation33_spill] sm:$0xff] }
 0x1d9   : > { %v2302_v3 = vadd.f32 %v2206_v30, %v2024_v57  ;;  %v3224_v57 = vld [vmem:[%s3418_s27 + $0x111] sm:$0xff] }
 0x1da   : > { %v2487_v44 = vpop.f32.mrf.mxu0  ;;  %3124 = vmatmul.msk.f32.gmra.mxu1 %vm238_vm1, %v3906_v62 }
 0x1db   : > { %v2580_v6 = vadd.f32 %v2484_v31, %v2302_v3  ;;  %3190 = vmatmul.msk.f32.gmra.mxu2 %vm238_vm1, %v3909_v13 }
 0x1dc   : > { %3256 = vmatmul.msk.f32.gmra.mxu3 %vm238_vm1, %v3222_v17 }
 0x1dd   : > { %3322 = vmatmul.msk.f32.gmra.mxu0 %vm238_vm1, %v3940_v16  ;;  %v2616_v20 = vadd.f32 %v4271_v27, %v2580_v6 }
 0x1de   : > { %v1931_v12 = vpop.f32.mrf.mxu2 }
 0x1df   : > { %vm2648_vm2 = vcmp.ge.f32.partialorder %v2616_v20, 0.0  ;;  %v2680_v62 = vmul.f32 0.2, %v2616_v20  ;;  %v2025_v13 = vadd.f32 %v1931_v12, %v1746_v39  ;;  %v2209_v52 = vpop.f32.mrf.mxu3  ;;  %v1655_v59 = vpop.f32.mrf.mxu1 }
 0x1e0   : > { %v1747_v48 = vadd.f32 %v1655_v59, %v4617_v55 }
 0x1e1   : > { %v2712_v23 = vsel %vm2648_vm2, %v2616_v20, %v2680_v62  ;;  %v2303_v54 = vadd.f32 %v2209_v52, %v2025_v13  ;;  %v3225_v62 = vld [vmem:[%s3418_s27 + $0x121] sm:$0xff] }
 0x1e2   : > { %v2490_v21 = vpop.f32.mrf.mxu0  ;;  %2745 = vst.msk [vmem:[%s4287_s16] sm:$0xff] %vm2744_vm3, %v2712_v23  ;;  %3125 = vmatmul.msk.f32.gmra.mxu1 %vm238_vm1, %v3923_v4  ;;  %v4619_v52 = vld [vmem:[#allocation34_spill] sm:$0xff] }
 0x1e3   : > { %v2581_v24 = vadd.f32 %v2487_v44, %v2303_v54  ;;  %3191 = vmatmul.msk.f32.gmra.mxu2 %vm238_vm1, %v3926_v14 }
 0x1e4   : > { %3257 = vmatmul.msk.f32.gmra.mxu3 %vm238_vm1, %v3223_v61 }
 0x1e5   : > { %3323 = vmatmul.msk.f32.gmra.mxu0 %vm238_vm1, %v3957_v32  ;;  %v2617_v56 = vadd.f32 %v4271_v27, %v2581_v24 }
 0x1e6   : > { %v1934_v26 = vpop.f32.mrf.mxu2 }
 0x1e7   : > { %vm2649_vm4 = vcmp.ge.f32.partialorder %v2617_v56, 0.0  ;;  %v2681_v34 = vmul.f32 0.2, %v2617_v56  ;;  %v2026_v31 = vadd.f32 %v1934_v26, %v1747_v48  ;;  %v2212_v58 = vpop.f32.mrf.mxu3  ;;  %v1658_v2 = vpop.f32.mrf.mxu1 }
 0x1e8   : > { %v1748_v3 = vadd.f32 %v1658_v2, %v4618_v36  ;;  %v3227_v36 = vld [vmem:[%s3418_s27 + $0x139] sm:$0xff] }
 0x1e9   : > { %v2713_v4 = vsel %vm2649_vm4, %v2617_v56, %v2681_v34  ;;  %v2304_v1 = vadd.f32 %v2212_v58, %v2026_v31  ;;  %v3226_v56 = vld [vmem:[%s3418_s27 + $0x129] sm:$0xff] }
 0x1ea   : > { %v2493_v30 = vpop.f32.mrf.mxu0  ;;  %2746 = vst.msk [vmem:[%s4287_s16 + $0x8] sm:$0xff] %vm2744_vm3, %v2713_v4  ;;  %3126 = vmatmul.msk.f32.gmra.mxu1 %vm238_vm1, %v3940_v16 }
 0x1eb   : > { %v2582_v14 = vadd.f32 %v2490_v21, %v2304_v1  ;;  %3192 = vmatmul.msk.f32.gmra.mxu2 %vm238_vm1, %v3943_v18 }
 0x1ec   : > { %3258 = vmatmul.msk.f32.gmra.mxu3 %vm238_vm1, %v3224_v57  ;;  %v3095_v57 = vld [vmem:[%s3418_s27 + $0x122] sm:$0xff] }
 0x1ed   : > { %3324 = vmatmul.msk.f32.gmra.mxu0 %vm238_vm1, %v3974_v45  ;;  %v2618_v17 = vadd.f32 %v4271_v27, %v2582_v14 }
 0x1ee   : > { %v1937_v44 = vpop.f32.mrf.mxu2 }
 0x1ef   : > { %vm2650_vm5 = vcmp.ge.f32.partialorder %v2618_v17, 0.0  ;;  %v2682_v6 = vmul.f32 0.2, %v2618_v17  ;;  %v2027_v5 = vadd.f32 %v1937_v44, %v1748_v3  ;;  %v2215_v39 = vpop.f32.mrf.mxu3  ;;  %v1661_v20 = vpop.f32.mrf.mxu1 }
 0x1f0   : > { %v1749_v59 = vadd.f32 %v1661_v20, %v4619_v52 }
 0x1f1   : > { %v2714_v16 = vsel %vm2650_vm5, %v2618_v17, %v2682_v6  ;;  %v2305_v12 = vadd.f32 %v2215_v39, %v2027_v5  ;;  %v4621_v17 = vld [vmem:[#allocation36_spill] sm:$0xff] }
 0x1f2   : > { %v2496_v13 = vpop.f32.mrf.mxu0  ;;  %2747 = vst.msk [vmem:[%s4287_s16 + $0x10] sm:$0xff] %vm2744_vm3, %v2714_v16  ;;  %3127 = vmatmul.msk.f32.gmra.mxu1 %vm238_vm1, %v3957_v32 }
 0x1f3   : > { %v2583_v18 = vadd.f32 %v2493_v30, %v2305_v12  ;;  %3193 = vmatmul.msk.f32.gmra.mxu2 %vm238_vm1, %v3960_v22  ;;  %v3161_v30 = vld [vmem:[%s3418_s27 + $0x138] sm:$0xff] }
 0x1f4   : > { %3259 = vmatmul.msk.f32.gmra.mxu3 %vm238_vm1, %v3225_v62  ;;  %v3096_v62 = vld [vmem:[%s3418_s27 + $0x12a] sm:$0xff] }
 0x1f5   : > { %3325 = vmatmul.msk.f32.gmra.mxu0 %vm238_vm1, %v3991_v0  ;;  %v2619_v23 = vadd.f32 %v4271_v27, %v2583_v18  ;;  %v4620_v0 = vld [vmem:[#allocation35_spill] sm:$0xff] }
 0x1f6   : > { %v1940_v54 = vpop.f32.mrf.mxu2 }
 0x1f7   : > { %vm2651_vm6 = vcmp.ge.f32.partialorder %v2619_v23, 0.0  ;;  %v2683_v61 = vmul.f32 0.2, %v2619_v23  ;;  %v2028_v21 = vadd.f32 %v1940_v54, %v1749_v59  ;;  %v2218_v24 = vpop.f32.mrf.mxu3  ;;  %v1664_v55 = vpop.f32.mrf.mxu1  ;;  %v3228_v59 = vld [vmem:[%s3418_s27 + $0x141] sm:$0xff] }
 0x1f8   : > { %v1750_v34 = vadd.f32 %v1664_v55, %v4620_v0  ;;  %v3294_v54 = vld [vmem:[%s3418_s27 + $0x142] sm:$0xff]  ;;  %v3163_v0 = vld [vmem:[%s3418_s27 + $0x150] sm:$0xff] }
 0x1f9   : > { %v2715_v32 = vsel %vm2651_vm6, %v2619_v23, %v2683_v61  ;;  %v2306_v48 = vadd.f32 %v2218_v24, %v2028_v21  ;;  %v4622_v61 = vld [vmem:[#allocation37_spill] sm:$0xff] }
 0x1fa   : > { %v2499_v22 = vpop.f32.mrf.mxu0  ;;  %2748 = vst.msk [vmem:[%s4287_s16 + $0x18] sm:$0xff] %vm2744_vm3, %v2715_v32  ;;  %3128 = vmatmul.msk.f32.gmra.mxu1 %vm238_vm1, %v3974_v45 }
 0x1fb   : > { %v2584_v26 = vadd.f32 %v2496_v13, %v2306_v48  ;;  %3194 = vmatmul.msk.f32.gmra.mxu2 %vm238_vm1, %v3977_v29  ;;  %v3162_v13 = vld [vmem:[%s3418_s27 + $0x140] sm:$0xff] }
 0x1fc   : > { %3260 = vmatmul.msk.f32.gmra.mxu3 %vm238_vm1, %v3226_v56 }
 0x1fd   : > { %3326 = vmatmul.msk.f32.gmra.mxu0 %vm238_vm1, %v4005_v37  ;;  %v2620_v31 = vadd.f32 %v4271_v27, %v2584_v26  ;;  %v3097_v26 = vld [vmem:[%s3418_s27 + $0x13a] sm:$0xff] }
 0x1fe   : > { %v1943_v58 = vpop.f32.mrf.mxu2 }
 0x1ff   : > { %vm2652_vm7 = vcmp.ge.f32.partialorder %v2620_v31, 0.0  ;;  %v2684_v2 = vmul.f32 0.2, %v2620_v31  ;;  %v2029_v4 = vadd.f32 %v1943_v58, %v1750_v34  ;;  %v2221_v1 = vpop.f32.mrf.mxu3  ;;  %v1667_v45 = vpop.f32.mrf.mxu1  ;;  %v3229_v58 = vld [vmem:[%s3418_s27 + $0x151] sm:$0xff] }
 0x200   : > { %v1751_v44 = vadd.f32 %v1667_v45, %v4621_v17  ;;  %v4623_v45 = vld [vmem:[#allocation38_spill] sm:$0xff]  ;;  %v3164_v17 = vld [vmem:[%s3418_s27 + $0x158] sm:$0xff] }
 0x201   : > { %v2716_v14 = vsel %vm2652_vm7, %v2620_v31, %v2684_v2  ;;  %v2307_v29 = vadd.f32 %v2221_v1, %v2029_v4  ;;  %v3295_v4 = vld [vmem:[%s3418_s27 + $0x152] sm:$0xff] }
 0x202   : > { %v2502_v3 = vpop.f32.mrf.mxu0  ;;  %2749 = vst.msk [vmem:[%s4287_s16 + $0x20] sm:$0xff] %vm2744_vm3, %v2716_v14  ;;  %3129 = vmatmul.msk.f32.gmra.mxu1 %vm238_vm1, %v3095_v57 }
 0x203   : > { %v2585_v37 = vadd.f32 %v2499_v22, %v2307_v29  ;;  %3195 = vmatmul.msk.f32.gmra.mxu2 %vm238_vm1, %v3161_v30 }
 0x204   : > { %3261 = vmatmul.msk.f32.gmra.mxu3 %vm238_vm1, %v3227_v36 }
 0x205   : > { %3327 = vmatmul.msk.f32.gmra.mxu0 %vm238_vm1, %v4019_v10  ;;  %v2621_v6 = vadd.f32 %v4271_v27, %v2585_v37 }
 0x206   : > { %v1946_v5 = vpop.f32.mrf.mxu2 }
 0x207   : > { %vm2653_vm8 = vcmp.ge.f32.partialorder %v2621_v6, 0.0  ;;  %v2685_v39 = vmul.f32 0.2, %v2621_v6  ;;  %v2030_v20 = vadd.f32 %v1946_v5, %v1751_v44  ;;  %v2224_v16 = vpop.f32.mrf.mxu3  ;;  %v1670_v12 = vpop.f32.mrf.mxu1  ;;  %v3230_v5 = vld [vmem:[%s3418_s27 + $0x159] sm:$0xff] }
 0x208   : > { %v1752_v21 = vadd.f32 %v1670_v12, %v4622_v61 }
 0x209   : > { %v2717_v18 = vsel %vm2653_vm8, %v2621_v6, %v2685_v39  ;;  %v2308_v52 = vadd.f32 %v2224_v16, %v2030_v20  ;;  %v3296_v20 = vld [vmem:[%s3418_s27 + $0x15a] sm:$0xff] }
 0x20a   : > { %v2505_v23 = vpop.f32.mrf.mxu0  ;;  %2750 = vst.msk [vmem:[%s4287_s16 + $0x28] sm:$0xff] %vm2744_vm3, %v2717_v18  ;;  %3130 = vmatmul.msk.f32.gmra.mxu1 %vm238_vm1, %v3096_v62 }
 0x20b   : > { %v2586_v10 = vadd.f32 %v2502_v3, %v2308_v52  ;;  %3196 = vmatmul.msk.f32.gmra.mxu2 %vm238_vm1, %v3162_v13 }
 0x20c   : > { %3262 = vmatmul.msk.f32.gmra.mxu3 %vm238_vm1, %v3228_v59 }
 0x20d   : > { %3328 = vmatmul.msk.f32.gmra.mxu0 %vm238_vm1, %v3294_v54  ;;  %v2622_v24 = vadd.f32 %v4271_v27, %v2586_v10  ;;  %v3165_v10 = vld [vmem:[%s3418_s27 + $0x168] sm:$0xff] }
 0x20e   : > { %v1949_v55 = vpop.f32.mrf.mxu2 }
 0x20f   : > { %vm2654_vm9 = vcmp.ge.f32.partialorder %v2622_v24, 0.0  ;;  %v2686_v32 = vmul.f32 0.2, %v2622_v24  ;;  %v2031_v48 = vadd.f32 %v1949_v55, %v1752_v21  ;;  %v2227_v56 = vpop.f32.mrf.mxu3  ;;  %v1673_v22 = vpop.f32.mrf.mxu1  ;;  %v3231_v21 = vld [vmem:[%s3418_s27 + $0x169] sm:$0xff] }
 0x210   : > { %v1753_v57 = vadd.f32 %v1673_v22, %v4623_v45  ;;  %v3297_v55 = vld [vmem:[%s3418_s27 + $0x16a] sm:$0xff]  ;;  %v3298_v45 = vld [vmem:[%s3418_s27 + $0x172] sm:$0xff] }
 0x211   : > { %v2718_v34 = vsel %vm2654_vm9, %v2622_v24, %v2686_v32  ;;  %v2309_v31 = vadd.f32 %v2227_v56, %v2031_v48 }
 0x212   : > { %v2508_v2 = vpop.f32.mrf.mxu0  ;;  %2751 = vst.msk [vmem:[%s4287_s16 + $0x30] sm:$0xff] %vm2744_vm3, %v2718_v34  ;;  %3131 = vmatmul.msk.f32.gmra.mxu1 %vm238_vm1, %v3097_v26 }
 0x213   : > { %v2587_v1 = vadd.f32 %v2505_v23, %v2309_v31  ;;  %3197 = vmatmul.msk.f32.gmra.mxu2 %vm238_vm1, %v3163_v0  ;;  %v3166_v31 = vld [vmem:[%s3418_s27 + $0x170] sm:$0xff] }
 0x214   : > { %3263 = vmatmul.msk.f32.gmra.mxu3 %vm238_vm1, %v3229_v58 }
 0x215   : > { %3329 = vmatmul.msk.f32.gmra.mxu0 %vm238_vm1, %v3295_v4  ;;  %v2623_v30 = vadd.f32 %v4271_v27, %v2587_v1 }
 0x216   : > { %v1952_v14 = vpop.f32.mrf.mxu2 }
 0x217   : > { %vm2655_vm10 = vcmp.ge.f32.partialorder %v2623_v30, 0.0  ;;  %v2687_v29 = vmul.f32 0.2, %v2623_v30  ;;  %v2032_v36 = vadd.f32 %v1952_v14, %v1753_v57  ;;  %v2230_v3 = vpop.f32.mrf.mxu3  ;;  %v1676_v37 = vpop.f32.mrf.mxu1 }
 0x218   : > { %v1754_v12 = vadd.f32 %v1676_v37, %v4022_v28 }
 0x219   : > { %v2719_v44 = vsel %vm2655_vm10, %v2623_v30, %v2687_v29  ;;  %v2310_v6 = vadd.f32 %v2230_v3, %v2032_v36 }
 0x21a   : > { %v2511_v39 = vpop.f32.mrf.mxu0  ;;  %2752 = vst.msk [vmem:[%s4287_s16 + $0x38] sm:$0xff] %vm2744_vm3, %v2719_v44  ;;  %3132 = vmatmul.msk.f32.gmra.mxu1 %vm238_vm1, %v3294_v54 }
 0x21b   : > { %v2588_v16 = vadd.f32 %v2508_v2, %v2310_v6  ;;  %3198 = vmatmul.msk.f32.gmra.mxu2 %vm238_vm1, %v3164_v17  ;;  %v3167_v17 = vld [vmem:[%s3418_s27 + $0x180] sm:$0xff] }
 0x21c   : > { %3264 = vmatmul.msk.f32.gmra.mxu3 %vm238_vm1, %v3230_v5  ;;  %v3233_v5 = vld [vmem:[%s3418_s27 + $0x181] sm:$0xff] }
 0x21d   : > { %3330 = vmatmul.msk.f32.gmra.mxu0 %vm238_vm1, %v3296_v20  ;;  %v2624_v62 = vadd.f32 %v4271_v27, %v2588_v16 }
 0x21e   : > { %v1955_v13 = vpop.f32.mrf.mxu2 }
 0x21f   : > { %vm2656_vm11 = vcmp.ge.f32.partialorder %v2624_v62, 0.0  ;;  %v2688_v18 = vmul.f32 0.2, %v2624_v62  ;;  %v2033_v52 = vadd.f32 %v1955_v13, %v1754_v12  ;;  %v2233_v59 = vpop.f32.mrf.mxu3  ;;  %v1679_v23 = vpop.f32.mrf.mxu1 }
 0x220   : > { %v1755_v28 = vadd.f32 %v1679_v23, %v4033_v33  ;;  %v3168_v23 = vld [vmem:[%s3418_s27 + $0x188] sm:$0xff] }
 0x221   : > { %v2720_v54 = vsel %vm2656_vm11, %v2624_v62, %v2688_v18  ;;  %v2311_v61 = vadd.f32 %v2233_v59, %v2033_v52 }
 0x222   : > { %v2514_v24 = vpop.f32.mrf.mxu0  ;;  %2753 = vst.msk [vmem:[%s4287_s16 + $0x40] sm:$0xff] %vm2744_vm3, %v2720_v54  ;;  %3133 = vmatmul.msk.f32.gmra.mxu1 %vm238_vm1, %v3295_v4  ;;  %v3232_v4 = vld [vmem:[%s3418_s27 + $0x171] sm:$0xff] }
 0x223   : > { %v2589_v32 = vadd.f32 %v2511_v39, %v2311_v61  ;;  %3199 = vmatmul.msk.f32.gmra.mxu2 %vm238_vm1, %v3165_v10  ;;  %v3234_v61 = vld [vmem:[%s3418_s27 + $0x189] sm:$0xff] }
 0x224   : > { %3265 = vmatmul.msk.f32.gmra.mxu3 %vm238_vm1, %v3231_v21 }
 0x225   : > { %3331 = vmatmul.msk.f32.gmra.mxu0 %vm238_vm1, %v3297_v55  ;;  %v2625_v48 = vadd.f32 %v4271_v27, %v2589_v32 }
 0x226   : > { %v1958_v56 = vpop.f32.mrf.mxu2 }
 0x227   : > { %vm2657_vm12 = vcmp.ge.f32.partialorder %v2625_v48, 0.0  ;;  %v2689_v22 = vmul.f32 0.2, %v2625_v48  ;;  %v2034_v26 = vadd.f32 %v1958_v56, %v1755_v28  ;;  %v2236_v0 = vpop.f32.mrf.mxu3  ;;  %v1682_v34 = vpop.f32.mrf.mxu1 }
 0x228   : > { %v1756_v33 = vadd.f32 %v1682_v34, %v4043_v38 }
 0x229   : > { %v2721_v58 = vsel %vm2657_vm12, %v2625_v48, %v2689_v22  ;;  %v2312_v2 = vadd.f32 %v2236_v0, %v2034_v26  ;;  %v3169_v0 = vld [vmem:[%s3418_s27 + $0x198] sm:$0xff] }
 0x22a   : > { %v2517_v1 = vpop.f32.mrf.mxu0  ;;  %2754 = vst.msk [vmem:[%s4287_s16 + $0x48] sm:$0xff] %vm2744_vm3, %v2721_v58  ;;  %3134 = vmatmul.msk.f32.gmra.mxu1 %vm238_vm1, %v3296_v20  ;;  %v3299_v20 = vld [vmem:[%s3418_s27 + $0x182] sm:$0xff]  ;;  %v3235_v58 = vld [vmem:[%s3418_s27 + $0x199] sm:$0xff] }
 0x22b   : > { %v2590_v57 = vadd.f32 %v2514_v24, %v2312_v2  ;;  %3200 = vmatmul.msk.f32.gmra.mxu2 %vm238_vm1, %v3166_v31  ;;  %v3300_v24 = vld [vmem:[%s3418_s27 + $0x18a] sm:$0xff] }
 0x22c   : > { %3266 = vmatmul.msk.f32.gmra.mxu3 %vm238_vm1, %v3232_v4  ;;  %v3301_v4 = vld [vmem:[%s3418_s27 + $0x19a] sm:$0xff] }
 0x22d   : > { %3332 = vmatmul.msk.f32.gmra.mxu0 %vm238_vm1, %v3298_v45  ;;  %v2626_v30 = vadd.f32 %v4271_v27, %v2590_v57 }
 0x22e   : > { %v1961_v14 = vpop.f32.mrf.mxu2 }
 0x22f   : > { %vm2658_vm13 = vcmp.ge.f32.partialorder %v2626_v30, 0.0  ;;  %v2690_v29 = vmul.f32 0.2, %v2626_v30  ;;  %v2035_v36 = vadd.f32 %v1961_v14, %v1756_v33  ;;  %v2239_v3 = vpop.f32.mrf.mxu3  ;;  %v1685_v37 = vpop.f32.mrf.mxu1 }
 0x230   : > { %v1757_v38 = vadd.f32 %v1685_v37, %v4053_v19 }
 0x231   : > { %v2722_v44 = vsel %vm2658_vm13, %v2626_v30, %v2690_v29  ;;  %v2313_v6 = vadd.f32 %v2239_v3, %v2035_v36  ;;  %v3170_v36 = vld [vmem:[%s3418_s27 + $0x1a0] sm:$0xff] }
 0x232   : > { %v2520_v39 = vpop.f32.mrf.mxu0  ;;  %2755 = vst.msk [vmem:[%s4287_s16 + $0x50] sm:$0xff] %vm2744_vm3, %v2722_v44  ;;  %3135 = vmatmul.msk.f32.gmra.mxu1 %vm238_vm1, %v3297_v55 }
 0x233   : > { %v2591_v16 = vadd.f32 %v2517_v1, %v2313_v6  ;;  %3201 = vmatmul.msk.f32.gmra.mxu2 %vm238_vm1, %v3167_v17  ;;  %v3236_v17 = vld [vmem:[%s3418_s27 + $0x1a1] sm:$0xff] }
 0x234   : > { %3267 = vmatmul.msk.f32.gmra.mxu3 %vm238_vm1, %v3233_v5  ;;  %v3302_v6 = vld [vmem:[%s3418_s27 + $0x1a2] sm:$0xff] }
 0x235   : > { %3333 = vmatmul.msk.f32.gmra.mxu0 %vm238_vm1, %v3299_v20  ;;  %v2627_v12 = vadd.f32 %v4271_v27, %v2591_v16 }
 0x236   : > { %v1964_v62 = vpop.f32.mrf.mxu2 }
 0x237   : > { %vm2659_vm14 = vcmp.ge.f32.partialorder %v2627_v12, 0.0  ;;  %v2691_v13 = vmul.f32 0.2, %v2627_v12  ;;  %v2036_v18 = vadd.f32 %v1964_v62, %v1757_v38  ;;  %v2242_v52 = vpop.f32.mrf.mxu3  ;;  %v1688_v59 = vpop.f32.mrf.mxu1 }
 0x238   : > { %v1758_v19 = vadd.f32 %v1688_v59, %v4064_v8 }
 0x239   : > { %v2723_v10 = vsel %vm2659_vm14, %v2627_v12, %v2691_v13  ;;  %v2314_v54 = vadd.f32 %v2242_v52, %v2036_v18 }
 0x23a   : > { %v2523_v21 = vpop.f32.mrf.mxu0  ;;  %2756 = vst.msk [vmem:[%s4287_s16 + $0x58] sm:$0xff] %vm2744_vm3, %v2723_v10  ;;  %3136 = vmatmul.msk.f32.gmra.mxu1 %vm238_vm1, %v3298_v45 }
 0x23b   : > { %v2592_v55 = vadd.f32 %v2520_v39, %v2314_v54  ;;  %3202 = vmatmul.msk.f32.gmra.mxu2 %vm238_vm1, %v3168_v23 }
 0x23c   : > { %3268 = vmatmul.msk.f32.gmra.mxu3 %vm238_vm1, %v3234_v61 }
 0x23d   : > { %3334 = vmatmul.msk.f32.gmra.mxu0 %vm238_vm1, %v3300_v24  ;;  %v2628_v32 = vadd.f32 %v4271_v27, %v2592_v55 }
 0x23e   : > { %v1967_v28 = vpop.f32.mrf.mxu2 }
 0x23f   : > { %vm2660_vm15 = vcmp.ge.f32.partialorder %v2628_v32, 0.0  ;;  %v2692_v48 = vmul.f32 0.2, %v2628_v32  ;;  %v2037_v56 = vadd.f32 %v1967_v28, %v1758_v19  ;;  %v2245_v22 = vpop.f32.mrf.mxu3  ;;  %v1691_v26 = vpop.f32.mrf.mxu1 }
 0x240   : > { %v1759_v8 = vadd.f32 %v1691_v26, %v4074_v25 }
 0x241   : > { %v2724_v34 = vsel %vm2660_vm15, %v2628_v32, %v2692_v48  ;;  %v2315_v31 = vadd.f32 %v2245_v22, %v2037_v56 }
 0x242   : > { %v2526_v2 = vpop.f32.mrf.mxu0  ;;  %2757 = vst.msk [vmem:[%s4287_s16 + $0x60] sm:$0xff] %vm2744_vm3, %v2724_v34  ;;  %3137 = vmatmul.msk.f32.gmra.mxu1 %vm238_vm1, %v3299_v20 }
 0x243   : > { %v2593_v1 = vadd.f32 %v2523_v21, %v2315_v31  ;;  %3203 = vmatmul.msk.f32.gmra.mxu2 %vm238_vm1, %v3169_v0 }
 0x244   : > { %3269 = vmatmul.msk.f32.gmra.mxu3 %vm238_vm1, %v3235_v58 }
 0x245   : > { %3335 = vmatmul.msk.f32.gmra.mxu0 %vm238_vm1, %v3301_v4  ;;  %v2629_v45 = vadd.f32 %v4271_v27, %v2593_v1 }
 0x246   : > { %v1970_v57 = vpop.f32.mrf.mxu2 }
 0x247   : > { %vm2661_vm0 = vcmp.ge.f32.partialorder %v2629_v45, 0.0  ;;  %v2693_v33 = vmul.f32 0.2, %v2629_v45  ;;  %v2038_v30 = vadd.f32 %v1970_v57, %v1759_v8  ;;  %v2248_v14 = vpop.f32.mrf.mxu3  ;;  %v1694_v29 = vpop.f32.mrf.mxu1 }
 0x248   : > { %v1760_v25 = vadd.f32 %v1694_v29, %v4081_v41 }
 0x249   : > { %v2725_v3 = vsel %vm2661_vm0, %v2629_v45, %v2693_v33  ;;  %v2316_v37 = vadd.f32 %v2248_v14, %v2038_v30 }
 0x24a   : > { %v2529_v44 = vpop.f32.mrf.mxu0  ;;  %2758 = vst.msk [vmem:[%s4287_s16 + $0x68] sm:$0xff] %vm2744_vm3, %v2725_v3  ;;  %3138 = vmatmul.msk.f32.gmra.mxu1 %vm238_vm1, %v3300_v24 }
 0x24b   : > { %v2594_v5 = vadd.f32 %v2526_v2, %v2316_v37  ;;  %3204 = vmatmul.msk.f32.gmra.mxu2 %vm238_vm1, %v3170_v36 }
 0x24c   : > { %3270 = vmatmul.msk.f32.gmra.mxu3 %vm238_vm1, %v3236_v17 }
 0x24d   : > { %3336 = vmatmul.msk.f32.gmra.mxu0 %vm238_vm1, %v3302_v6  ;;  %v2630_v39 = vadd.f32 %v4271_v27, %v2594_v5 }
 0x24e   : > { %v1973_v20 = vpop.f32.mrf.mxu2 }
 0x24f   : > { %vm2662_vm2 = vcmp.ge.f32.partialorder %v2630_v39, 0.0  ;;  %v2694_v16 = vmul.f32 0.2, %v2630_v39  ;;  %v2039_v38 = vadd.f32 %v1973_v20, %v1760_v25  ;;  %v2251_v12 = vpop.f32.mrf.mxu3  ;;  %v1697_v62 = vpop.f32.mrf.mxu1 }
 0x250   : > { %v1761_v23 = vadd.f32 %v1697_v62, %v4092_v42 }
 0x251   : > { %v2726_v13 = vsel %vm2662_vm2, %v2630_v39, %v2694_v16  ;;  %v2317_v18 = vadd.f32 %v2251_v12, %v2039_v38 }
 0x252   : > { %v2532_v52 = vpop.f32.mrf.mxu0  ;;  %2759 = vst.msk [vmem:[%s4287_s16 + $0x70] sm:$0xff] %vm2744_vm3, %v2726_v13 }
 0x253   : > { %v2595_v59 = vadd.f32 %v2529_v44, %v2317_v18 }
 0x255   : > { %v2631_v10 = vadd.f32 %v4271_v27, %v2595_v59 }
 0x256   : > { %v1976_v41 = vpop.f32.mrf.mxu2 }
 0x257   : > { %vm2663_vm1 = vcmp.ge.f32.partialorder %v2631_v10, 0.0  ;;  %v2695_v54 = vmul.f32 0.2, %v2631_v10  ;;  %v2040_v61 = vadd.f32 %v1976_v41, %v1761_v23  ;;  %v2254_v21 = vpop.f32.mrf.mxu3  ;;  %v1700_v24 = vpop.f32.mrf.mxu1 }
 0x258   : > { %v1762_v48 = vadd.f32 %v1700_v24, %v4103_v43 }
 0x259   : > { %v2727_v55 = vsel %vm2663_vm1, %v2631_v10, %v2695_v54  ;;  %v2318_v19 = vadd.f32 %v2254_v21, %v2040_v61 }
 0x25a   : > { %v2535_v32 = vpop.f32.mrf.mxu0  ;;  %2760 = vst.msk [vmem:[%s4287_s16 + $0x78] sm:$0xff] %vm2744_vm3, %v2727_v55 }
 0x25b   : > { %v2596_v28 = vadd.f32 %v2532_v52, %v2318_v19 }
 0x25d   : > { %v2632_v56 = vadd.f32 %v4271_v27, %v2596_v28 }
 0x25e   : > { %v1979_v42 = vpop.f32.mrf.mxu2 }
 0x25f   : > { %vm2664_vm4 = vcmp.ge.f32.partialorder %v2632_v56, 0.0  ;;  %v2696_v22 = vmul.f32 0.2, %v2632_v56  ;;  %v2041_v26 = vadd.f32 %v1979_v42, %v1762_v48  ;;  %v2257_v0 = vpop.f32.mrf.mxu3  ;;  %v1703_v34 = vpop.f32.mrf.mxu1 }
 0x260   : > { %v1763_v1 = vadd.f32 %v1703_v34, %v4114_v46 }
 0x261   : > { %v2728_v31 = vsel %vm2664_vm4, %v2632_v56, %v2696_v22  ;;  %v2319_v58 = vadd.f32 %v2257_v0, %v2041_v26 }
 0x262   : > { %v2538_v2 = vpop.f32.mrf.mxu0  ;;  %2761 = vst.msk [vmem:[%s4287_s16 + $0x80] sm:$0xff] %vm2744_vm3, %v2728_v31 }
 0x263   : > { %v2597_v4 = vadd.f32 %v2535_v32, %v2319_v58 }
 0x265   : > { %v2633_v8 = vadd.f32 %v4271_v27, %v2597_v4 }
 0x266   : > { %v1982_v43 = vpop.f32.mrf.mxu2 }
 0x267   : > { %vm2665_vm5 = vcmp.ge.f32.partialorder %v2633_v8, 0.0  ;;  %v2697_v45 = vmul.f32 0.2, %v2633_v8  ;;  %v2042_v57 = vadd.f32 %v1982_v43, %v1763_v1  ;;  %v2260_v33 = vpop.f32.mrf.mxu3  ;;  %v1706_v30 = vpop.f32.mrf.mxu1 }
 0x268   : > { %v1764_v37 = vadd.f32 %v1706_v30, %v4126_v53 }
 0x269   : > { %v2729_v14 = vsel %vm2665_vm5, %v2633_v8, %v2697_v45  ;;  %v2320_v29 = vadd.f32 %v2260_v33, %v2042_v57 }
 0x26a   : > { %v2541_v36 = vpop.f32.mrf.mxu0  ;;  %2762 = vst.msk [vmem:[%s4287_s16 + $0x88] sm:$0xff] %vm2744_vm3, %v2729_v14 }
 0x26b   : > { %v2598_v3 = vadd.f32 %v2538_v2, %v2320_v29 }
 0x26d   : > { %v2634_v17 = vadd.f32 %v4271_v27, %v2598_v3 }
 0x26e   : > { %v1985_v46 = vpop.f32.mrf.mxu2 }
 0x26f   : > { %vm2666_vm6 = vcmp.ge.f32.partialorder %v2634_v17, 0.0  ;;  %v2698_v44 = vmul.f32 0.2, %v2634_v17  ;;  %v2043_v6 = vadd.f32 %v1985_v46, %v1764_v37  ;;  %v2263_v5 = vpop.f32.mrf.mxu3  ;;  %v1709_v25 = vpop.f32.mrf.mxu1 }
 0x270   : > { %v1765_v12 = vadd.f32 %v1709_v25, %v4137_v47 }
 0x271   : > { %v2730_v39 = vsel %vm2666_vm6, %v2634_v17, %v2698_v44  ;;  %v2321_v20 = vadd.f32 %v2263_v5, %v2043_v6 }
 0x272   : > { %v2544_v16 = vpop.f32.mrf.mxu0  ;;  %2763 = vst.msk [vmem:[%s4287_s16 + $0x90] sm:$0xff] %vm2744_vm3, %v2730_v39 }
 0x273   : > { %v2599_v38 = vadd.f32 %v2541_v36, %v2321_v20 }
 0x275   : > { %v2635_v62 = vadd.f32 %v4271_v27, %v2599_v38 }
 0x276   : > { %v1988_v53 = vpop.f32.mrf.mxu2 }
 0x277   : > { %vm2667_vm7 = vcmp.ge.f32.partialorder %v2635_v62, 0.0  ;;  %v2699_v13 = vmul.f32 0.2, %v2635_v62  ;;  %v2044_v18 = vadd.f32 %v1988_v53, %v1765_v12  ;;  %v2266_v52 = vpop.f32.mrf.mxu3  ;;  %v1712_v59 = vpop.f32.mrf.mxu1 }
 0x278   : > { %v1766_v61 = vadd.f32 %v1712_v59, %v4148_v15 }
 0x279   : > { %v2731_v23 = vsel %vm2667_vm7, %v2635_v62, %v2699_v13  ;;  %v2322_v10 = vadd.f32 %v2266_v52, %v2044_v18 }
 0x27a   : > { %v2547_v41 = vpop.f32.mrf.mxu0  ;;  %2764 = vst.msk [vmem:[%s4287_s16 + $0x98] sm:$0xff] %vm2744_vm3, %v2731_v23 }
 0x27b   : > { %v2600_v54 = vadd.f32 %v2544_v16, %v2322_v10 }
 0x27d   : > { %v2636_v21 = vadd.f32 %v4271_v27, %v2600_v54 }
 0x27e   : > { %v1991_v47 = vpop.f32.mrf.mxu2 }
 0x27f   : > { %vm2668_vm8 = vcmp.ge.f32.partialorder %v2636_v21, 0.0  ;;  %v2700_v24 = vmul.f32 0.2, %v2636_v21  ;;  %v2045_v55 = vadd.f32 %v1991_v47, %v1766_v61  ;;  %v2269_v19 = vpop.f32.mrf.mxu3  ;;  %v1715_v32 = vpop.f32.mrf.mxu1 }
 0x280   : > { %v1767_v22 = vadd.f32 %v1715_v32, %v4159_v40 }
 0x281   : > { %v2732_v28 = vsel %vm2668_vm8, %v2636_v21, %v2700_v24  ;;  %v2323_v48 = vadd.f32 %v2269_v19, %v2045_v55 }
 0x282   : > { %v2550_v56 = vpop.f32.mrf.mxu0  ;;  %2765 = vst.msk [vmem:[%s4287_s16 + $0xa0] sm:$0xff] %vm2744_vm3, %v2732_v28 }
 0x283   : > { %v2601_v42 = vadd.f32 %v2547_v41, %v2323_v48 }
 0x285   : > { %v2637_v26 = vadd.f32 %v4271_v27, %v2601_v42 }
 0x286   : > { %v1994_v15 = vpop.f32.mrf.mxu2 }
 0x287   : > { %vm2669_vm9 = vcmp.ge.f32.partialorder %v2637_v26, 0.0  ;;  %v2701_v0 = vmul.f32 0.2, %v2637_v26  ;;  %v2046_v34 = vadd.f32 %v1994_v15, %v1767_v22  ;;  %v2272_v31 = vpop.f32.mrf.mxu3  ;;  %v1718_v58 = vpop.f32.mrf.mxu1 }
 0x288   : > { %v1768_v43 = vadd.f32 %v1718_v58, %v4170_v63 }
 0x289   : > { %v2733_v2 = vsel %vm2669_vm9, %v2637_v26, %v2701_v0  ;;  %v2324_v4 = vadd.f32 %v2272_v31, %v2046_v34 }
 0x28a   : > { %v2553_v1 = vpop.f32.mrf.mxu0  ;;  %2766 = vst.msk [vmem:[%s4287_s16 + $0xa8] sm:$0xff] %vm2744_vm3, %v2733_v2 }
 0x28b   : > { %v2602_v8 = vadd.f32 %v2550_v56, %v2324_v4 }
 0x28d   : > { %v2638_v45 = vadd.f32 %v4271_v27, %v2602_v8 }
 0x28e   : > { %v1997_v40 = vpop.f32.mrf.mxu2 }
 0x28f   : > { %vm2670_vm10 = vcmp.ge.f32.partialorder %v2638_v45, 0.0  ;;  %v2702_v57 = vmul.f32 0.2, %v2638_v45  ;;  %v2047_v33 = vadd.f32 %v1997_v40, %v1768_v43  ;;  %v2275_v30 = vpop.f32.mrf.mxu3  ;;  %v1721_v14 = vpop.f32.mrf.mxu1 }
 0x290   : > { %v1769_v17 = vadd.f32 %v1721_v14, %v4181_v51 }
 0x291   : > { %v2734_v29 = vsel %vm2670_vm10, %v2638_v45, %v2702_v57  ;;  %v2325_v36 = vadd.f32 %v2275_v30, %v2047_v33 }
 0x292   : > { %v2556_v3 = vpop.f32.mrf.mxu0  ;;  %2767 = vst.msk [vmem:[%s4287_s16 + $0xb0] sm:$0xff] %vm2744_vm3, %v2734_v29 }
 0x293   : > { %v2603_v37 = vadd.f32 %v2553_v1, %v2325_v36 }
 0x295   : > { %v2639_v46 = vadd.f32 %v4271_v27, %v2603_v37 }
 0x296   : > { %v2000_v63 = vpop.f32.mrf.mxu2 }
 0x297   : > { %vm2671_vm11 = vcmp.ge.f32.partialorder %v2639_v46, 0.0  ;;  %v2703_v44 = vmul.f32 0.2, %v2639_v46  ;;  %v2048_v6 = vadd.f32 %v2000_v63, %v1769_v17  ;;  %v2278_v5 = vpop.f32.mrf.mxu3  ;;  %v1724_v25 = vpop.f32.mrf.mxu1 }
 0x298   : > { %v1770_v12 = vadd.f32 %v1724_v25, %v4192_v9 }
 0x299   : > { %v2735_v39 = vsel %vm2671_vm11, %v2639_v46, %v2703_v44  ;;  %v2326_v20 = vadd.f32 %v2278_v5, %v2048_v6 }
 0x29a   : > { %v2559_v16 = vpop.f32.mrf.mxu0  ;;  %2768 = vst.msk [vmem:[%s4287_s16 + $0xb8] sm:$0xff] %vm2744_vm3, %v2735_v39 }
 0x29b   : > { %v2604_v38 = vadd.f32 %v2556_v3, %v2326_v20 }
 0x29d   : > { %v2640_v62 = vadd.f32 %v4271_v27, %v2604_v38 }
 0x29e   : > { %v2003_v51 = vpop.f32.mrf.mxu2 }
 0x29f   : > { %vm2672_vm12 = vcmp.ge.f32.partialorder %v2640_v62, 0.0  ;;  %v2704_v53 = vmul.f32 0.2, %v2640_v62  ;;  %v2049_v13 = vadd.f32 %v2003_v51, %v1770_v12  ;;  %v2281_v18 = vpop.f32.mrf.mxu3  ;;  %v1727_v52 = vpop.f32.mrf.mxu1 }
 0x2a0   : > { %v1771_v54 = vadd.f32 %v1727_v52, %v4203_v50 }
 0x2a1   : > { %v2736_v59 = vsel %vm2672_vm12, %v2640_v62, %v2704_v53  ;;  %v2327_v23 = vadd.f32 %v2281_v18, %v2049_v13 }
 0x2a2   : > { %v2562_v10 = vpop.f32.mrf.mxu0  ;;  %2769 = vst.msk [vmem:[%s4287_s16 + $0xc0] sm:$0xff] %vm2744_vm3, %v2736_v59 }
 0x2a3   : > { %v2605_v41 = vadd.f32 %v2559_v16, %v2327_v23 }
 0x2a5   : > { %v2641_v61 = vadd.f32 %v4271_v27, %v2605_v41 }
 0x2a6   : > { %v2006_v9 = vpop.f32.mrf.mxu2 }
 0x2a7   : > { %vm2673_vm13 = vcmp.ge.f32.partialorder %v2641_v61, 0.0  ;;  %v2705_v21 = vmul.f32 0.2, %v2641_v61  ;;  %v2050_v47 = vadd.f32 %v2006_v9, %v1771_v54  ;;  %v2284_v24 = vpop.f32.mrf.mxu3  ;;  %v1730_v55 = vpop.f32.mrf.mxu1 }
 0x2a8   : > { %v1772_v56 = vadd.f32 %v1730_v55, %v4214_v60 }
 0x2a9   : > { %v2737_v19 = vsel %vm2673_vm13, %v2641_v61, %v2705_v21  ;;  %v2328_v32 = vadd.f32 %v2284_v24, %v2050_v47 }
 0x2aa   : > { %v2565_v28 = vpop.f32.mrf.mxu0  ;;  %2770 = vst.msk [vmem:[%s4287_s16 + $0xc8] sm:$0xff] %vm2744_vm3, %v2737_v19 }
 0x2ab   : > { %v2606_v48 = vadd.f32 %v2562_v10, %v2328_v32 }
 0x2ad   : > { %v2642_v42 = vadd.f32 %v4271_v27, %v2606_v48 }
 0x2ae   : > { %v2009_v50 = vpop.f32.mrf.mxu2 }
 0x2af   : > { %vm2674_vm14 = vcmp.ge.f32.partialorder %v2642_v42, 0.0  ;;  %v2706_v22 = vmul.f32 0.2, %v2642_v42  ;;  %v2051_v26 = vadd.f32 %v2009_v50, %v1772_v56  ;;  %v2287_v15 = vpop.f32.mrf.mxu3  ;;  %v1733_v0 = vpop.f32.mrf.mxu1 }
 0x2b0   : > { %v1773_v4 = vadd.f32 %v1733_v0, %v4225_v7 }
 0x2b1   : > { %v2738_v34 = vsel %vm2674_vm14, %v2642_v42, %v2706_v22  ;;  %v2329_v31 = vadd.f32 %v2287_v15, %v2051_v26 }
 0x2b2   : > { %2771 = vst.msk [vmem:[%s4287_s16 + $0xd0] sm:$0xff] %vm2744_vm3, %v2738_v34  ;;  %v2568_v58 = vpop.f32.mrf.mxu0 }
 0x2b3   : > { %v2607_v2 = vadd.f32 %v2565_v28, %v2329_v31 }
 0x2b5   : > { %v2643_v1 = vadd.f32 %v4271_v27, %v2607_v2 }
 0x2b6   : > { %v2012_v60 = vpop.f32.mrf.mxu2 }
 0x2b7   : > { %vm2675_vm15 = vcmp.ge.f32.partialorder %v2643_v1, 0.0  ;;  %v2707_v8 = vmul.f32 0.2, %v2643_v1  ;;  %v2052_v43 = vadd.f32 %v2012_v60, %v1773_v4  ;;  %v2290_v45 = vpop.f32.mrf.mxu3  ;;  %v1736_v40 = vpop.f32.mrf.mxu1 }
 0x2b8   : > { %v1774_v29 = vadd.f32 %v1736_v40, %v4236_v11 }
 0x2b9   : > { %v2739_v57 = vsel %vm2675_vm15, %v2643_v1, %v2707_v8  ;;  %v2330_v33 = vadd.f32 %v2290_v45, %v2052_v43 }
 0x2ba   : > { %2772 = vst.msk [vmem:[%s4287_s16 + $0xd8] sm:$0xff] %vm2744_vm3, %v2739_v57  ;;  %v2571_v14 = vpop.f32.mrf.mxu0 }
 0x2bb   : > { %v2608_v30 = vadd.f32 %v2568_v58, %v2330_v33 }
 0x2bd   : > { %v2644_v36 = vadd.f32 %v4271_v27, %v2608_v30 }
 0x2be   : > { %v2015_v7 = vpop.f32.mrf.mxu2 }
 0x2bf   : > { %vm2676_vm0 = vcmp.ge.f32.partialorder %v2644_v36, 0.0  ;;  %v2708_v3 = vmul.f32 0.2, %v2644_v36  ;;  %v2053_v37 = vadd.f32 %v2015_v7, %v1774_v29  ;;  %v2293_v17 = vpop.f32.mrf.mxu3  ;;  %v1739_v46 = vpop.f32.mrf.mxu1 }
 0x2c0   : > { %v1775_v5 = vadd.f32 %v1739_v46, %v4247_v35 }
 0x2c1   : > { %v2740_v63 = vsel %vm2676_vm0, %v2644_v36, %v2708_v3  ;;  %v2331_v44 = vadd.f32 %v2293_v17, %v2053_v37 }
 0x2c2   : > { %2773 = vst.msk [vmem:[%s4287_s16 + $0xe0] sm:$0xff] %vm2744_vm3, %v2740_v63  ;;  %v2574_v11 = vpop.f32.mrf.mxu0 }
 0x2c3   : > { %v2609_v6 = vadd.f32 %v2571_v14, %v2331_v44 }
 0x2c5   : > { %v2645_v25 = vadd.f32 %v4271_v27, %v2609_v6 }
 0x2c6   : > { %v2018_v39 = vpop.f32.mrf.mxu2 }
 0x2c7   : > { %vm2677_vm2 = vcmp.ge.f32.partialorder %v2645_v25, 0.0  ;;  %v2709_v20 = vmul.f32 0.2, %v2645_v25  ;;  %v2054_v16 = vadd.f32 %v2018_v39, %v1775_v5  ;;  %v2296_v38 = vpop.f32.mrf.mxu3  ;;  %v1742_v51 = vpop.f32.mrf.mxu1 }
 0x2c8   : > { %v1776_v13 = vadd.f32 %v1742_v51, %v4258_v49 }
 0x2c9   : > { %v2741_v12 = vsel %vm2677_vm2, %v2645_v25, %v2709_v20  ;;  %v2332_v62 = vadd.f32 %v2296_v38, %v2054_v16 }
 0x2ca   : > { %2774 = vst.msk [vmem:[%s4287_s16 + $0xe8] sm:$0xff] %vm2744_vm3, %v2741_v12  ;;  %v2577_v10 = vpop.f32.mrf.mxu0 }
 0x2cb   : > { %v2610_v53 = vadd.f32 %v2574_v11, %v2332_v62 }
 0x2cd   : > { %v2646_v35 = vadd.f32 %v4271_v27, %v2610_v53 }
 0x2ce   : > { %v2021_v18 = vpop.f32.mrf.mxu2 }
 0x2cf   : > { %vm2678_vm1 = vcmp.ge.f32.partialorder %v2646_v35, 0.0  ;;  %v2710_v52 = vmul.f32 0.2, %v2646_v35  ;;  %v2055_v59 = vadd.f32 %v2021_v18, %v1776_v13  ;;  %v2299_v23 = vpop.f32.mrf.mxu3 }
 0x2d1   : > { %v2742_v41 = vsel %vm2678_vm1, %v2646_v35, %v2710_v52  ;;  %v2333_v54 = vadd.f32 %v2299_v23, %v2055_v59 }
 0x2d2   : > { %2775 = vst.msk [vmem:[%s4287_s16 + $0xf0] sm:$0xff] %vm2744_vm3, %v2742_v41 }
 0x2d3   : > { %v2611_v61 = vadd.f32 %v2577_v10, %v2333_v54 }
 0x2d5   : > { %v2647_v9 = vadd.f32 %v4271_v27, %v2611_v61 }
 0x2d7   : > { %vm2679_vm4 = vcmp.ge.f32.partialorder %v2647_v9, 0.0  ;;  %v2711_v21 = vmul.f32 0.2, %v2647_v9 }
 0x2d9   : > { %v2743_v47 = vsel %vm2679_vm4, %v2647_v9, %v2711_v21 }
 0x2da   : > { %2776 = vst.msk [vmem:[%s4287_s16 + $0xf8] sm:$0xff] %vm2744_vm3, %v2743_v47 }
 0x2db PF: > { %s13_s12 = sadd.s32 1, %s3359_s12  }
 0x2dc   : > { %p10_p4 = scmp.ge.s32.totalorder %s13_s12, 4  }
 0x2de   :  { %12 = sbr.rel (!%p10_p4) target bundleno = 1 (0x1), region = 72 }

</bundles_post_ra>
